<compile_context>
chip_gen: v7x
topology: tpu7x:2x2x1
jax: 0.10.0
libtpu: 0.0.40
codegen_flags: <defaults>
</compile_context>

<pallas_src>
import functools

import jax
import jax.numpy as jnp
from jax.experimental import pallas as pl
from jax.experimental.pallas import tpu as pltpu


def _round_up(x, m):
    return (x + m - 1) // m * m


def _pick_time_block(T, cap=16):
    """Largest divisor of T that is <= cap, so the grid tiles T exactly."""
    tt = 1
    for d in range(1, min(T, cap) + 1):
        if T % d == 0:
            tt = d
    return tt


def _pad_gate_lanes(a, H, Hp):
    """(..., 4H) -> (..., 4*Hp): gate k moves to lanes [k*Hp, k*Hp+H), rest 0."""
    if Hp == H:
        return a
    zeros = jnp.zeros(a.shape[:-1] + (Hp - H,), a.dtype)
    parts = []
    for k in range(4):
        parts.append(a[..., k * H:(k + 1) * H])
        parts.append(zeros)
    return jnp.concatenate(parts, axis=-1)


# ----------------------------------------------------------------------------
# Pallas kernel: serial LSTM recurrence, TT time steps per grid iteration.
#   gx_ref : (TT, B, 4*Hp)  precomputed x @ W_ih^T + bias (gate-lane padded)
#   whh_ref: (Hp, 4*Hp)     W_hh^T, gate-lane padded (resident across grid)
#   out_ref: (TT, B, Hp)    hidden states for this time block
#   h_scr/c_scr: (B, Hp)    recurrent state carried across grid iterations
# ----------------------------------------------------------------------------
def _lstm_recurrence_kernel(gx_ref, whh_ref, out_ref, h_scr, c_scr, *, TT, Hp,
                            reverse):
    @pl.when(pl.program_id(0) == 0)
    def _():
        h_scr[...] = jnp.zeros_like(h_scr)
        c_scr[...] = jnp.zeros_like(c_scr)

    whh = whh_ref[...]          # (Hp, 4Hp)
    h = h_scr[...]              # (B, Hp)
    c = c_scr[...]              # (B, Hp)

    order = range(TT - 1, -1, -1) if reverse else range(TT)
    for tt in order:            # static unroll; TT is a small Python int
        # Only the recurrent matmul is on the serial critical path now.
        z = gx_ref[tt] + jnp.dot(h, whh, preferred_element_type=jnp.float32)
        i_g = jax.nn.sigmoid(z[:, 0 * Hp:1 * Hp])
        f_g = jax.nn.sigmoid(z[:, 1 * Hp:2 * Hp])
        g_g = jnp.tanh(z[:, 2 * Hp:3 * Hp])
        o_g = jax.nn.sigmoid(z[:, 3 * Hp:4 * Hp])
        c = f_g * c + i_g * g_g
        h = o_g * jnp.tanh(c)
        out_ref[tt] = h         # lane-dense (Hp multiple of 128) store

    h_scr[...] = h
    c_scr[...] = c


def _lstm_layer(x_tbd, w_ih, w_hh, b_ih, b_hh, *, reverse=False,
                time_block_cap=16):
    """One unidirectional LSTM layer over time-major input (T, B, Din)."""
    T, B, _ = x_tbd.shape
    H = w_ih.shape[0] // 4
    Hp = max(_round_up(H, 128), 128)

    # --- Hoisted input projection: one big GEMM over all T time steps. ------
    bias = (b_ih + b_hh).astype(jnp.float32)
    gx = jnp.einsum("tbd,gd->tbg", x_tbd.astype(jnp.float32),
                    w_ih.astype(jnp.float32)) + bias          # (T, B, 4H)
    gx = _pad_gate_lanes(gx, H, Hp)                           # (T, B, 4Hp)

    # --- Recurrent weight, transposed + gate-lane padded: (Hp, 4Hp). --------
    whhT = _pad_gate_lanes(jnp.transpose(w_hh).astype(jnp.float32), H, Hp)
    whhT = jnp.pad(whhT, ((0, Hp - H), (0, 0)))

    TT = _pick_time_block(T, time_block_cap)
    NB = T // TT

    if reverse:
        t_map = lambda j: (NB - 1 - j, 0, 0)
    else:
        t_map = lambda j: (j, 0, 0)

    kernel = functools.partial(_lstm_recurrence_kernel, TT=TT, Hp=Hp,
                               reverse=reverse)

    h_all = pl.pallas_call(
        kernel,
        out_shape=jax.ShapeDtypeStruct((T, B, Hp), jnp.float32),
        grid_spec=pltpu.PrefetchScalarGridSpec(
            num_scalar_prefetch=0,
            grid=(NB,),
            in_specs=[
                pl.BlockSpec((TT, B, 4 * Hp), t_map),           # gates_x block
                pl.BlockSpec((Hp, 4 * Hp), lambda j: (0, 0)),   # W_hh^T resident
            ],
            out_specs=pl.BlockSpec((TT, B, Hp), t_map),
            scratch_shapes=[
                pltpu.VMEM((B, Hp), jnp.float32),               # h state
                pltpu.VMEM((B, Hp), jnp.float32),               # c state
            ],
        ),
        compiler_params=pltpu.CompilerParams(
            dimension_semantics=("arbitrary",),                 # serial recurrence
            vmem_limit_bytes=32 * 1024 * 1024,
        ),
    )(gx, whhT)

    return h_all[..., :H]                                       # drop lane pad


# ----------------------------------------------------------------------------
# SequenceBlock: parameter init + multi-layer (optionally bidirectional) forward
# ----------------------------------------------------------------------------
def init_sequence_block_params(key, input_dim, hidden, num_layers,
                               bidirectional=False):
    """PyTorch-style uniform(-1/sqrt(H), 1/sqrt(H)) init, deterministic."""
    k = 1.0 / jnp.sqrt(jnp.float32(hidden))
    num_dir = 2 if bidirectional else 1
    params = []
    for layer in range(num_layers):
        in_dim = input_dim if layer == 0 else hidden * num_dir
        dirs = []
        for _ in range(num_dir):
            key, k1, k2, k3, k4 = jax.random.split(key, 5)
            w_ih = jax.random.uniform(k1, (4 * hidden, in_dim), jnp.float32, -k, k)
            w_hh = jax.random.uniform(k2, (4 * hidden, hidden), jnp.float32, -k, k)
            b_ih = jax.random.uniform(k3, (4 * hidden,), jnp.float32, -k, k)
            b_hh = jax.random.uniform(k4, (4 * hidden,), jnp.float32, -k, k)
            dirs.append((w_ih, w_hh, b_ih, b_hh))
        params.append(dirs)
    return params


def sequence_block_forward(x_btd, params, hidden, bidirectional=False):
    """x_btd: (B, T, D) batch-first, like PyTorch nn.LSTM(batch_first=True)."""
    # Transpose folds into the first projection GEMM; activations stay
    # time-major between layers, single transpose back at the end.
    h = jnp.transpose(x_btd, (1, 0, 2)).astype(jnp.float32)     # (T, B, D)
    for dirs in params:
        w_ih, w_hh, b_ih, b_hh = dirs[0]
        h_fwd = _lstm_layer(h, w_ih, w_hh, b_ih, b_hh, reverse=False)
        if bidirectional:
            w_ih_r, w_hh_r, b_ih_r, b_hh_r = dirs[1]
            h_bwd = _lstm_layer(h, w_ih_r, w_hh_r, b_ih_r, b_hh_r, reverse=True)
            h = jnp.concatenate([h_fwd, h_bwd], axis=-1)
        else:
            h = h_fwd
        # NOTE: inter-layer dropout is identity in eval mode (omitted).
    out = jnp.transpose(h, (1, 0, 2))                           # (B, T, nd*H)
    if bidirectional:
        # Matches SequenceBlock.forward: sum of the two directions.
        out = out[:, :, :hidden] + out[:, :, hidden:]
    return out


# ----------------------------------------------------------------------------
# Pure-JAX reference (lax.scan) for correctness check
# ----------------------------------------------------------------------------
def _ref_layer(x_tbd, w_ih, w_hh, bias):
    _, B, _ = x_tbd.shape
    H = w_hh.shape[1]

    def step(carry, x_t):
        h, c = carry
        z = x_t @ w_ih.T + h @ w_hh.T + bias
        i = jax.nn.sigmoid(z[:, 0 * H:1 * H])
        f = jax.nn.sigmoid(z[:, 1 * H:2 * H])
        g = jnp.tanh(z[:, 2 * H:3 * H])
        o = jax.nn.sigmoid(z[:, 3 * H:4 * H])
        c = f * c + i * g
        h = o * jnp.tanh(c)
        return (h, c), h

    init = (jnp.zeros((B, H), jnp.float32), jnp.zeros((B, H), jnp.float32))
    _, hs = jax.lax.scan(step, init, x_tbd)
    return hs


def sequence_block_reference(x_btd, params, hidden, bidirectional=False):
    h = jnp.transpose(x_btd, (1, 0, 2)).astype(jnp.float32)
    for dirs in params:
        w_ih, w_hh, b_ih, b_hh = dirs[0]
        h_fwd = _ref_layer(h, w_ih, w_hh, b_ih + b_hh)
        if bidirectional:
            w_ih_r, w_hh_r, b_ih_r, b_hh_r = dirs[1]
            h_bwd = jnp.flip(_ref_layer(jnp.flip(h, 0), w_ih_r, w_hh_r,
                                        b_ih_r + b_hh_r), 0)
            h = jnp.concatenate([h_fwd, h_bwd], axis=-1)
        else:
            h = h_fwd
    out = jnp.transpose(h, (1, 0, 2))
    if bidirectional:
        out = out[:, :, :hidden] + out[:, :, hidden:]
    return out


if __name__ == "__main__":
    B, T = 2, 8
    INPUT_DIM, HIDDEN, NUM_LAYERS = 16, 32, 2

    key = jax.random.PRNGKey(0)
    key, xk = jax.random.split(key)
    x = jax.random.normal(xk, (B, T, INPUT_DIM), jnp.float32)

    # Unidirectional (module default).
    key, pk = jax.random.split(key)
    params = init_sequence_block_params(pk, INPUT_DIM, HIDDEN, NUM_LAYERS, False)
    out = jax.block_until_ready(sequence_block_forward(x, params, HIDDEN, False))
    ref = jax.block_until_ready(sequence_block_reference(x, params, HIDDEN, False))
    assert out.shape == (B, T, HIDDEN), out.shape
    err = float(jnp.max(jnp.abs(out - ref)))
    assert err < 1e-4, err

    # Bidirectional path (exercises the reversed-index_map kernel).
    key, pk2 = jax.random.split(key)
    params_bi = init_sequence_block_params(pk2, INPUT_DIM, HIDDEN, NUM_LAYERS, True)
    out_bi = jax.block_until_ready(sequence_block_forward(x, params_bi, HIDDEN, True))
    ref_bi = jax.block_until_ready(sequence_block_reference(x, params_bi, HIDDEN, True))
    assert out_bi.shape == (B, T, HIDDEN), out_bi.shape
    err_bi = float(jnp.max(jnp.abs(out_bi - ref_bi)))
    assert err_bi < 1e-4, err_bi

    print("KERNEL_OK")
</pallas_src>

<mosaic_0001>
module attributes {stable_mosaic.version = 11 : i64} {
  func.func @_lstm_recurrence_kernel(%arg0: i32, %arg1: memref<8x2x512xf32, #tpu.memory_space<vmem>>, %arg2: memref<128x512xf32, #tpu.memory_space<vmem>>, %arg3: memref<8x2x128xf32, #tpu.memory_space<vmem>>, %arg4: memref<2x128xf32, #tpu.memory_space<vmem>>, %arg5: memref<2x128xf32, #tpu.memory_space<vmem>>) attributes {dimension_semantics = [#tpu.dimension_semantics<arbitrary>], iteration_bounds = array<i64: 1>, scalar_prefetch = 0 : i64, scratch_operands = 2 : i64, tpu.core_type = #tpu.core_type<tc>, window_params = [{transform_indices = @transform_0, window_bounds = array<i64: 8, 2, 512>}, {pipeline_mode = #tpu.pipeline_mode<synchronous>, transform_indices = @transform_1, window_bounds = array<i64: 128, 512>}, {transform_indices = @transform_2, window_bounds = array<i64: 8, 2, 128>}]} {
    %c0_i32 = arith.constant 0 : i32
    %0 = arith.cmpi eq, %arg0, %c0_i32 : i32
    %1 = arith.extui %0 : i1 to i32
    %c0_i32_0 = arith.constant 0 : i32
    %2 = arith.cmpi ne, %1, %c0_i32_0 : i32
    scf.if %2 {
      %cst_82 = arith.constant 0.000000e+00 : f32
      %264 = vector.broadcast %cst_82 : f32 to vector<2x128xf32>
      %c0_83 = arith.constant 0 : index
      %c0_84 = arith.constant 0 : index
      %265 = vector.load %arg4[%c0_83, %c0_84] : memref<2x128xf32, #tpu.memory_space<vmem>>, vector<2x128xf32>
      tpu.vector_store %arg4[%c0_83, %c0_84], %264 {strides = array<i32>} : memref<2x128xf32, #tpu.memory_space<vmem>>, vector<2x128xf32>,
      %cst_85 = arith.constant 0.000000e+00 : f32
      %266 = vector.broadcast %cst_85 : f32 to vector<2x128xf32>
      %c0_86 = arith.constant 0 : index
      %c0_87 = arith.constant 0 : index
      %267 = vector.load %arg5[%c0_86, %c0_87] : memref<2x128xf32, #tpu.memory_space<vmem>>, vector<2x128xf32>
      tpu.vector_store %arg5[%c0_86, %c0_87], %266 {strides = array<i32>} : memref<2x128xf32, #tpu.memory_space<vmem>>, vector<2x128xf32>,
    } else {
    }
    %c0 = arith.constant 0 : index
    %c0_1 = arith.constant 0 : index
    %3 = vector.load %arg2[%c0, %c0_1] : memref<128x512xf32, #tpu.memory_space<vmem>>, vector<128x512xf32>
    %c0_2 = arith.constant 0 : index
    %c0_3 = arith.constant 0 : index
    %4 = vector.load %arg4[%c0_2, %c0_3] : memref<2x128xf32, #tpu.memory_space<vmem>>, vector<2x128xf32>
    %c0_4 = arith.constant 0 : index
    %c0_5 = arith.constant 0 : index
    %5 = vector.load %arg5[%c0_4, %c0_5] : memref<2x128xf32, #tpu.memory_space<vmem>>, vector<2x128xf32>
    %c0_6 = arith.constant 0 : index
    %c0_7 = arith.constant 0 : index
    %c0_8 = arith.constant 0 : index
    %6 = vector.load %arg1[%c0_6, %c0_7, %c0_8] : memref<8x2x512xf32, #tpu.memory_space<vmem>>, vector<1x2x512xf32>
    %7 = vector.shape_cast %6 : vector<1x2x512xf32> to vector<2x512xf32>
    %cst = arith.constant dense<0.000000e+00> : vector<2x512xf32>
    %8 = tpu.matmul %4, %3, %cst {dimension_numbers = #tpu.dot_dimension_numbers<[1], [0], [0], [1], [0, 0, 1, 1], [], []>} : vector<2x128xf32>, vector<128x512xf32>, vector<2x512xf32> -> vector<2x512xf32>
    %9 = arith.addf %7, %8 : vector<2x512xf32>
    %10 = vector.extract_strided_slice %9 {offsets = [0, 0], sizes = [2, 128], strides = [1, 1]} : vector<2x512xf32> to vector<2x128xf32>
    %11 = arith.negf %10 : vector<2x128xf32>
    %12 = math.exp %11 : vector<2x128xf32>
    %cst_9 = arith.constant 1.000000e+00 : f32
    %13 = vector.broadcast %cst_9 : f32 to vector<2x128xf32>
    %14 = arith.addf %13, %12 : vector<2x128xf32>
    %15 = arith.divf %13, %14 : vector<2x128xf32>
    %16 = vector.extract_strided_slice %9 {offsets = [0, 128], sizes = [2, 128], strides = [1, 1]} : vector<2x512xf32> to vector<2x128xf32>
    %17 = arith.negf %16 : vector<2x128xf32>
    %18 = math.exp %17 : vector<2x128xf32>
    %cst_10 = arith.constant 1.000000e+00 : f32
    %19 = vector.broadcast %cst_10 : f32 to vector<2x128xf32>
    %20 = arith.addf %19, %18 : vector<2x128xf32>
    %21 = arith.divf %19, %20 : vector<2x128xf32>
    %22 = vector.extract_strided_slice %9 {offsets = [0, 256], sizes = [2, 128], strides = [1, 1]} : vector<2x512xf32> to vector<2x128xf32>
    %23 = math.tanh %22 : vector<2x128xf32>
    %24 = vector.extract_strided_slice %9 {offsets = [0, 384], sizes = [2, 128], strides = [1, 1]} : vector<2x512xf32> to vector<2x128xf32>
    %25 = arith.negf %24 : vector<2x128xf32>
    %26 = math.exp %25 : vector<2x128xf32>
    %cst_11 = arith.constant 1.000000e+00 : f32
    %27 = vector.broadcast %cst_11 : f32 to vector<2x128xf32>
    %28 = arith.addf %27, %26 : vector<2x128xf32>
    %29 = arith.divf %27, %28 : vector<2x128xf32>
    %30 = arith.mulf %21, %5 : vector<2x128xf32>
    %31 = arith.mulf %15, %23 : vector<2x128xf32>
    %32 = arith.addf %30, %31 : vector<2x128xf32>
    %33 = math.tanh %32 : vector<2x128xf32>
    %34 = arith.mulf %29, %33 : vector<2x128xf32>
    %c0_12 = arith.constant 0 : index
    %c0_13 = arith.constant 0 : index
    %c0_14 = arith.constant 0 : index
    %35 = vector.load %arg3[%c0_12, %c0_13, %c0_14] : memref<8x2x128xf32, #tpu.memory_space<vmem>>, vector<1x2x128xf32>
    %36 = vector.shape_cast %35 : vector<1x2x128xf32> to vector<2x128xf32>
    %37 = vector.shape_cast %34 : vector<2x128xf32> to vector<1x2x128xf32>
    tpu.vector_store %arg3[%c0_12, %c0_13, %c0_14], %37 {strides = array<i32>} : memref<8x2x128xf32, #tpu.memory_space<vmem>>, vector<1x2x128xf32>,
    %c1 = arith.constant 1 : index
    %c0_15 = arith.constant 0 : index
    %c0_16 = arith.constant 0 : index
    %38 = vector.load %arg1[%c1, %c0_15, %c0_16] : memref<8x2x512xf32, #tpu.memory_space<vmem>>, vector<1x2x512xf32>
    %39 = vector.shape_cast %38 : vector<1x2x512xf32> to vector<2x512xf32>
    %cst_17 = arith.constant dense<0.000000e+00> : vector<2x512xf32>
    %40 = tpu.matmul %34, %3, %cst_17 {dimension_numbers = #tpu.dot_dimension_numbers<[1], [0], [0], [1], [0, 0, 1, 1], [], []>} : vector<2x128xf32>, vector<128x512xf32>, vector<2x512xf32> -> vector<2x512xf32>
    %41 = arith.addf %39, %40 : vector<2x512xf32>
    %42 = vector.extract_strided_slice %41 {offsets = [0, 0], sizes = [2, 128], strides = [1, 1]} : vector<2x512xf32> to vector<2x128xf32>
    %43 = arith.negf %42 : vector<2x128xf32>
    %44 = math.exp %43 : vector<2x128xf32>
    %cst_18 = arith.constant 1.000000e+00 : f32
    %45 = vector.broadcast %cst_18 : f32 to vector<2x128xf32>
    %46 = arith.addf %45, %44 : vector<2x128xf32>
    %47 = arith.divf %45, %46 : vector<2x128xf32>
    %48 = vector.extract_strided_slice %41 {offsets = [0, 128], sizes = [2, 128], strides = [1, 1]} : vector<2x512xf32> to vector<2x128xf32>
    %49 = arith.negf %48 : vector<2x128xf32>
    %50 = math.exp %49 : vector<2x128xf32>
    %cst_19 = arith.constant 1.000000e+00 : f32
    %51 = vector.broadcast %cst_19 : f32 to vector<2x128xf32>
    %52 = arith.addf %51, %50 : vector<2x128xf32>
    %53 = arith.divf %51, %52 : vector<2x128xf32>
    %54 = vector.extract_strided_slice %41 {offsets = [0, 256], sizes = [2, 128], strides = [1, 1]} : vector<2x512xf32> to vector<2x128xf32>
    %55 = math.tanh %54 : vector<2x128xf32>
    %56 = vector.extract_strided_slice %41 {offsets = [0, 384], sizes = [2, 128], strides = [1, 1]} : vector<2x512xf32> to vector<2x128xf32>
    %57 = arith.negf %56 : vector<2x128xf32>
    %58 = math.exp %57 : vector<2x128xf32>
    %cst_20 = arith.constant 1.000000e+00 : f32
    %59 = vector.broadcast %cst_20 : f32 to vector<2x128xf32>
    %60 = arith.addf %59, %58 : vector<2x128xf32>
    %61 = arith.divf %59, %60 : vector<2x128xf32>
    %62 = arith.mulf %53, %32 : vector<2x128xf32>
    %63 = arith.mulf %47, %55 : vector<2x128xf32>
    %64 = arith.addf %62, %63 : vector<2x128xf32>
    %65 = math.tanh %64 : vector<2x128xf32>
    %66 = arith.mulf %61, %65 : vector<2x128xf32>
    %c1_21 = arith.constant 1 : index
    %c0_22 = arith.constant 0 : index
    %c0_23 = arith.constant 0 : index
    %67 = vector.load %arg3[%c1_21, %c0_22, %c0_23] : memref<8x2x128xf32, #tpu.memory_space<vmem>>, vector<1x2x128xf32>
    %68 = vector.shape_cast %67 : vector<1x2x128xf32> to vector<2x128xf32>
    %69 = vector.shape_cast %66 : vector<2x128xf32> to vector<1x2x128xf32>
    tpu.vector_store %arg3[%c1_21, %c0_22, %c0_23], %69 {strides = array<i32>} : memref<8x2x128xf32, #tpu.memory_space<vmem>>, vector<1x2x128xf32>,
    %c2 = arith.constant 2 : index
    %c0_24 = arith.constant 0 : index
    %c0_25 = arith.constant 0 : index
    %70 = vector.load %arg1[%c2, %c0_24, %c0_25] : memref<8x2x512xf32, #tpu.memory_space<vmem>>, vector<1x2x512xf32>
    %71 = vector.shape_cast %70 : vector<1x2x512xf32> to vector<2x512xf32>
    %cst_26 = arith.constant dense<0.000000e+00> : vector<2x512xf32>
    %72 = tpu.matmul %66, %3, %cst_26 {dimension_numbers = #tpu.dot_dimension_numbers<[1], [0], [0], [1], [0, 0, 1, 1], [], []>} : vector<2x128xf32>, vector<128x512xf32>, vector<2x512xf32> -> vector<2x512xf32>
    %73 = arith.addf %71, %72 : vector<2x512xf32>
    %74 = vector.extract_strided_slice %73 {offsets = [0, 0], sizes = [2, 128], strides = [1, 1]} : vector<2x512xf32> to vector<2x128xf32>
    %75 = arith.negf %74 : vector<2x128xf32>
    %76 = math.exp %75 : vector<2x128xf32>
    %cst_27 = arith.constant 1.000000e+00 : f32
    %77 = vector.broadcast %cst_27 : f32 to vector<2x128xf32>
    %78 = arith.addf %77, %76 : vector<2x128xf32>
    %79 = arith.divf %77, %78 : vector<2x128xf32>
    %80 = vector.extract_strided_slice %73 {offsets = [0, 128], sizes = [2, 128], strides = [1, 1]} : vector<2x512xf32> to vector<2x128xf32>
    %81 = arith.negf %80 : vector<2x128xf32>
    %82 = math.exp %81 : vector<2x128xf32>
    %cst_28 = arith.constant 1.000000e+00 : f32
    %83 = vector.broadcast %cst_28 : f32 to vector<2x128xf32>
    %84 = arith.addf %83, %82 : vector<2x128xf32>
    %85 = arith.divf %83, %84 : vector<2x128xf32>
    %86 = vector.extract_strided_slice %73 {offsets = [0, 256], sizes = [2, 128], strides = [1, 1]} : vector<2x512xf32> to vector<2x128xf32>
    %87 = math.tanh %86 : vector<2x128xf32>
    %88 = vector.extract_strided_slice %73 {offsets = [0, 384], sizes = [2, 128], strides = [1, 1]} : vector<2x512xf32> to vector<2x128xf32>
    %89 = arith.negf %88 : vector<2x128xf32>
    %90 = math.exp %89 : vector<2x128xf32>
    %cst_29 = arith.constant 1.000000e+00 : f32
    %91 = vector.broadcast %cst_29 : f32 to vector<2x128xf32>
    %92 = arith.addf %91, %90 : vector<2x128xf32>
    %93 = arith.divf %91, %92 : vector<2x128xf32>
    %94 = arith.mulf %85, %64 : vector<2x128xf32>
    %95 = arith.mulf %79, %87 : vector<2x128xf32>
    %96 = arith.addf %94, %95 : vector<2x128xf32>
    %97 = math.tanh %96 : vector<2x128xf32>
    %98 = arith.mulf %93, %97 : vector<2x128xf32>
    %c2_30 = arith.constant 2 : index
    %c0_31 = arith.constant 0 : index
    %c0_32 = arith.constant 0 : index
    %99 = vector.load %arg3[%c2_30, %c0_31, %c0_32] : memref<8x2x128xf32, #tpu.memory_space<vmem>>, vector<1x2x128xf32>
    %100 = vector.shape_cast %99 : vector<1x2x128xf32> to vector<2x128xf32>
    %101 = vector.shape_cast %98 : vector<2x128xf32> to vector<1x2x128xf32>
    tpu.vector_store %arg3[%c2_30, %c0_31, %c0_32], %101 {strides = array<i32>} : memref<8x2x128xf32, #tpu.memory_space<vmem>>, vector<1x2x128xf32>,
    %c3 = arith.constant 3 : index
    %c0_33 = arith.constant 0 : index
    %c0_34 = arith.constant 0 : index
    %102 = vector.load %arg1[%c3, %c0_33, %c0_34] : memref<8x2x512xf32, #tpu.memory_space<vmem>>, vector<1x2x512xf32>
    %103 = vector.shape_cast %102 : vector<1x2x512xf32> to vector<2x512xf32>
    %cst_35 = arith.constant dense<0.000000e+00> : vector<2x512xf32>
    %104 = tpu.matmul %98, %3, %cst_35 {dimension_numbers = #tpu.dot_dimension_numbers<[1], [0], [0], [1], [0, 0, 1, 1], [], []>} : vector<2x128xf32>, vector<128x512xf32>, vector<2x512xf32> -> vector<2x512xf32>
    %105 = arith.addf %103, %104 : vector<2x512xf32>
    %106 = vector.extract_strided_slice %105 {offsets = [0, 0], sizes = [2, 128], strides = [1, 1]} : vector<2x512xf32> to vector<2x128xf32>
    %107 = arith.negf %106 : vector<2x128xf32>
    %108 = math.exp %107 : vector<2x128xf32>
    %cst_36 = arith.constant 1.000000e+00 : f32
    %109 = vector.broadcast %cst_36 : f32 to vector<2x128xf32>
    %110 = arith.addf %109, %108 : vector<2x128xf32>
    %111 = arith.divf %109, %110 : vector<2x128xf32>
    %112 = vector.extract_strided_slice %105 {offsets = [0, 128], sizes = [2, 128], strides = [1, 1]} : vector<2x512xf32> to vector<2x128xf32>
    %113 = arith.negf %112 : vector<2x128xf32>
    %114 = math.exp %113 : vector<2x128xf32>
    %cst_37 = arith.constant 1.000000e+00 : f32
    %115 = vector.broadcast %cst_37 : f32 to vector<2x128xf32>
    %116 = arith.addf %115, %114 : vector<2x128xf32>
    %117 = arith.divf %115, %116 : vector<2x128xf32>
    %118 = vector.extract_strided_slice %105 {offsets = [0, 256], sizes = [2, 128], strides = [1, 1]} : vector<2x512xf32> to vector<2x128xf32>
    %119 = math.tanh %118 : vector<2x128xf32>
    %120 = vector.extract_strided_slice %105 {offsets = [0, 384], sizes = [2, 128], strides = [1, 1]} : vector<2x512xf32> to vector<2x128xf32>
    %121 = arith.negf %120 : vector<2x128xf32>
    %122 = math.exp %121 : vector<2x128xf32>
    %cst_38 = arith.constant 1.000000e+00 : f32
    %123 = vector.broadcast %cst_38 : f32 to vector<2x128xf32>
    %124 = arith.addf %123, %122 : vector<2x128xf32>
    %125 = arith.divf %123, %124 : vector<2x128xf32>
    %126 = arith.mulf %117, %96 : vector<2x128xf32>
    %127 = arith.mulf %111, %119 : vector<2x128xf32>
    %128 = arith.addf %126, %127 : vector<2x128xf32>
    %129 = math.tanh %128 : vector<2x128xf32>
    %130 = arith.mulf %125, %129 : vector<2x128xf32>
    %c3_39 = arith.constant 3 : index
    %c0_40 = arith.constant 0 : index
    %c0_41 = arith.constant 0 : index
    %131 = vector.load %arg3[%c3_39, %c0_40, %c0_41] : memref<8x2x128xf32, #tpu.memory_space<vmem>>, vector<1x2x128xf32>
    %132 = vector.shape_cast %131 : vector<1x2x128xf32> to vector<2x128xf32>
    %133 = vector.shape_cast %130 : vector<2x128xf32> to vector<1x2x128xf32>
    tpu.vector_store %arg3[%c3_39, %c0_40, %c0_41], %133 {strides = array<i32>} : memref<8x2x128xf32, #tpu.memory_space<vmem>>, vector<1x2x128xf32>,
    %c4 = arith.constant 4 : index
    %c0_42 = arith.constant 0 : index
    %c0_43 = arith.constant 0 : index
    %134 = vector.load %arg1[%c4, %c0_42, %c0_43] : memref<8x2x512xf32, #tpu.memory_space<vmem>>, vector<1x2x512xf32>
    %135 = vector.shape_cast %134 : vector<1x2x512xf32> to vector<2x512xf32>
    %cst_44 = arith.constant dense<0.000000e+00> : vector<2x512xf32>
    %136 = tpu.matmul %130, %3, %cst_44 {dimension_numbers = #tpu.dot_dimension_numbers<[1], [0], [0], [1], [0, 0, 1, 1], [], []>} : vector<2x128xf32>, vector<128x512xf32>, vector<2x512xf32> -> vector<2x512xf32>
    %137 = arith.addf %135, %136 : vector<2x512xf32>
    %138 = vector.extract_strided_slice %137 {offsets = [0, 0], sizes = [2, 128], strides = [1, 1]} : vector<2x512xf32> to vector<2x128xf32>
    %139 = arith.negf %138 : vector<2x128xf32>
    %140 = math.exp %139 : vector<2x128xf32>
    %cst_45 = arith.constant 1.000000e+00 : f32
    %141 = vector.broadcast %cst_45 : f32 to vector<2x128xf32>
    %142 = arith.addf %141, %140 : vector<2x128xf32>
    %143 = arith.divf %141, %142 : vector<2x128xf32>
    %144 = vector.extract_strided_slice %137 {offsets = [0, 128], sizes = [2, 128], strides = [1, 1]} : vector<2x512xf32> to vector<2x128xf32>
    %145 = arith.negf %144 : vector<2x128xf32>
    %146 = math.exp %145 : vector<2x128xf32>
    %cst_46 = arith.constant 1.000000e+00 : f32
    %147 = vector.broadcast %cst_46 : f32 to vector<2x128xf32>
    %148 = arith.addf %147, %146 : vector<2x128xf32>
    %149 = arith.divf %147, %148 : vector<2x128xf32>
    %150 = vector.extract_strided_slice %137 {offsets = [0, 256], sizes = [2, 128], strides = [1, 1]} : vector<2x512xf32> to vector<2x128xf32>
    %151 = math.tanh %150 : vector<2x128xf32>
    %152 = vector.extract_strided_slice %137 {offsets = [0, 384], sizes = [2, 128], strides = [1, 1]} : vector<2x512xf32> to vector<2x128xf32>
    %153 = arith.negf %152 : vector<2x128xf32>
    %154 = math.exp %153 : vector<2x128xf32>
    %cst_47 = arith.constant 1.000000e+00 : f32
    %155 = vector.broadcast %cst_47 : f32 to vector<2x128xf32>
    %156 = arith.addf %155, %154 : vector<2x128xf32>
    %157 = arith.divf %155, %156 : vector<2x128xf32>
    %158 = arith.mulf %149, %128 : vector<2x128xf32>
    %159 = arith.mulf %143, %151 : vector<2x128xf32>
    %160 = arith.addf %158, %159 : vector<2x128xf32>
    %161 = math.tanh %160 : vector<2x128xf32>
    %162 = arith.mulf %157, %161 : vector<2x128xf32>
    %c4_48 = arith.constant 4 : index
    %c0_49 = arith.constant 0 : index
    %c0_50 = arith.constant 0 : index
    %163 = vector.load %arg3[%c4_48, %c0_49, %c0_50] : memref<8x2x128xf32, #tpu.memory_space<vmem>>, vector<1x2x128xf32>
    %164 = vector.shape_cast %163 : vector<1x2x128xf32> to vector<2x128xf32>
    %165 = vector.shape_cast %162 : vector<2x128xf32> to vector<1x2x128xf32>
    tpu.vector_store %arg3[%c4_48, %c0_49, %c0_50], %165 {strides = array<i32>} : memref<8x2x128xf32, #tpu.memory_space<vmem>>, vector<1x2x128xf32>,
    %c5 = arith.constant 5 : index
    %c0_51 = arith.constant 0 : index
    %c0_52 = arith.constant 0 : index
    %166 = vector.load %arg1[%c5, %c0_51, %c0_52] : memref<8x2x512xf32, #tpu.memory_space<vmem>>, vector<1x2x512xf32>
    %167 = vector.shape_cast %166 : vector<1x2x512xf32> to vector<2x512xf32>
    %cst_53 = arith.constant dense<0.000000e+00> : vector<2x512xf32>
    %168 = tpu.matmul %162, %3, %cst_53 {dimension_numbers = #tpu.dot_dimension_numbers<[1], [0], [0], [1], [0, 0, 1, 1], [], []>} : vector<2x128xf32>, vector<128x512xf32>, vector<2x512xf32> -> vector<2x512xf32>
    %169 = arith.addf %167, %168 : vector<2x512xf32>
    %170 = vector.extract_strided_slice %169 {offsets = [0, 0], sizes = [2, 128], strides = [1, 1]} : vector<2x512xf32> to vector<2x128xf32>
    %171 = arith.negf %170 : vector<2x128xf32>
    %172 = math.exp %171 : vector<2x128xf32>
    %cst_54 = arith.constant 1.000000e+00 : f32
    %173 = vector.broadcast %cst_54 : f32 to vector<2x128xf32>
    %174 = arith.addf %173, %172 : vector<2x128xf32>
    %175 = arith.divf %173, %174 : vector<2x128xf32>
    %176 = vector.extract_strided_slice %169 {offsets = [0, 128], sizes = [2, 128], strides = [1, 1]} : vector<2x512xf32> to vector<2x128xf32>
    %177 = arith.negf %176 : vector<2x128xf32>
    %178 = math.exp %177 : vector<2x128xf32>
    %cst_55 = arith.constant 1.000000e+00 : f32
    %179 = vector.broadcast %cst_55 : f32 to vector<2x128xf32>
    %180 = arith.addf %179, %178 : vector<2x128xf32>
    %181 = arith.divf %179, %180 : vector<2x128xf32>
    %182 = vector.extract_strided_slice %169 {offsets = [0, 256], sizes = [2, 128], strides = [1, 1]} : vector<2x512xf32> to vector<2x128xf32>
    %183 = math.tanh %182 : vector<2x128xf32>
    %184 = vector.extract_strided_slice %169 {offsets = [0, 384], sizes = [2, 128], strides = [1, 1]} : vector<2x512xf32> to vector<2x128xf32>
    %185 = arith.negf %184 : vector<2x128xf32>
    %186 = math.exp %185 : vector<2x128xf32>
    %cst_56 = arith.constant 1.000000e+00 : f32
    %187 = vector.broadcast %cst_56 : f32 to vector<2x128xf32>
    %188 = arith.addf %187, %186 : vector<2x128xf32>
    %189 = arith.divf %187, %188 : vector<2x128xf32>
    %190 = arith.mulf %181, %160 : vector<2x128xf32>
    %191 = arith.mulf %175, %183 : vector<2x128xf32>
    %192 = arith.addf %190, %191 : vector<2x128xf32>
    %193 = math.tanh %192 : vector<2x128xf32>
    %194 = arith.mulf %189, %193 : vector<2x128xf32>
    %c5_57 = arith.constant 5 : index
    %c0_58 = arith.constant 0 : index
    %c0_59 = arith.constant 0 : index
    %195 = vector.load %arg3[%c5_57, %c0_58, %c0_59] : memref<8x2x128xf32, #tpu.memory_space<vmem>>, vector<1x2x128xf32>
    %196 = vector.shape_cast %195 : vector<1x2x128xf32> to vector<2x128xf32>
    %197 = vector.shape_cast %194 : vector<2x128xf32> to vector<1x2x128xf32>
    tpu.vector_store %arg3[%c5_57, %c0_58, %c0_59], %197 {strides = array<i32>} : memref<8x2x128xf32, #tpu.memory_space<vmem>>, vector<1x2x128xf32>,
    %c6 = arith.constant 6 : index
    %c0_60 = arith.constant 0 : index
    %c0_61 = arith.constant 0 : index
    %198 = vector.load %arg1[%c6, %c0_60, %c0_61] : memref<8x2x512xf32, #tpu.memory_space<vmem>>, vector<1x2x512xf32>
    %199 = vector.shape_cast %198 : vector<1x2x512xf32> to vector<2x512xf32>
    %cst_62 = arith.constant dense<0.000000e+00> : vector<2x512xf32>
    %200 = tpu.matmul %194, %3, %cst_62 {dimension_numbers = #tpu.dot_dimension_numbers<[1], [0], [0], [1], [0, 0, 1, 1], [], []>} : vector<2x128xf32>, vector<128x512xf32>, vector<2x512xf32> -> vector<2x512xf32>
    %201 = arith.addf %199, %200 : vector<2x512xf32>
    %202 = vector.extract_strided_slice %201 {offsets = [0, 0], sizes = [2, 128], strides = [1, 1]} : vector<2x512xf32> to vector<2x128xf32>
    %203 = arith.negf %202 : vector<2x128xf32>
    %204 = math.exp %203 : vector<2x128xf32>
    %cst_63 = arith.constant 1.000000e+00 : f32
    %205 = vector.broadcast %cst_63 : f32 to vector<2x128xf32>
    %206 = arith.addf %205, %204 : vector<2x128xf32>
    %207 = arith.divf %205, %206 : vector<2x128xf32>
    %208 = vector.extract_strided_slice %201 {offsets = [0, 128], sizes = [2, 128], strides = [1, 1]} : vector<2x512xf32> to vector<2x128xf32>
    %209 = arith.negf %208 : vector<2x128xf32>
    %210 = math.exp %209 : vector<2x128xf32>
    %cst_64 = arith.constant 1.000000e+00 : f32
    %211 = vector.broadcast %cst_64 : f32 to vector<2x128xf32>
    %212 = arith.addf %211, %210 : vector<2x128xf32>
    %213 = arith.divf %211, %212 : vector<2x128xf32>
    %214 = vector.extract_strided_slice %201 {offsets = [0, 256], sizes = [2, 128], strides = [1, 1]} : vector<2x512xf32> to vector<2x128xf32>
    %215 = math.tanh %214 : vector<2x128xf32>
    %216 = vector.extract_strided_slice %201 {offsets = [0, 384], sizes = [2, 128], strides = [1, 1]} : vector<2x512xf32> to vector<2x128xf32>
    %217 = arith.negf %216 : vector<2x128xf32>
    %218 = math.exp %217 : vector<2x128xf32>
    %cst_65 = arith.constant 1.000000e+00 : f32
    %219 = vector.broadcast %cst_65 : f32 to vector<2x128xf32>
    %220 = arith.addf %219, %218 : vector<2x128xf32>
    %221 = arith.divf %219, %220 : vector<2x128xf32>
    %222 = arith.mulf %213, %192 : vector<2x128xf32>
    %223 = arith.mulf %207, %215 : vector<2x128xf32>
    %224 = arith.addf %222, %223 : vector<2x128xf32>
    %225 = math.tanh %224 : vector<2x128xf32>
    %226 = arith.mulf %221, %225 : vector<2x128xf32>
    %c6_66 = arith.constant 6 : index
    %c0_67 = arith.constant 0 : index
    %c0_68 = arith.constant 0 : index
    %227 = vector.load %arg3[%c6_66, %c0_67, %c0_68] : memref<8x2x128xf32, #tpu.memory_space<vmem>>, vector<1x2x128xf32>
    %228 = vector.shape_cast %227 : vector<1x2x128xf32> to vector<2x128xf32>
    %229 = vector.shape_cast %226 : vector<2x128xf32> to vector<1x2x128xf32>
    tpu.vector_store %arg3[%c6_66, %c0_67, %c0_68], %229 {strides = array<i32>} : memref<8x2x128xf32, #tpu.memory_space<vmem>>, vector<1x2x128xf32>,
    %c7 = arith.constant 7 : index
    %c0_69 = arith.constant 0 : index
    %c0_70 = arith.constant 0 : index
    %230 = vector.load %arg1[%c7, %c0_69, %c0_70] : memref<8x2x512xf32, #tpu.memory_space<vmem>>, vector<1x2x512xf32>
    %231 = vector.shape_cast %230 : vector<1x2x512xf32> to vector<2x512xf32>
    %cst_71 = arith.constant dense<0.000000e+00> : vector<2x512xf32>
    %232 = tpu.matmul %226, %3, %cst_71 {dimension_numbers = #tpu.dot_dimension_numbers<[1], [0], [0], [1], [0, 0, 1, 1], [], []>} : vector<2x128xf32>, vector<128x512xf32>, vector<2x512xf32> -> vector<2x512xf32>
    %233 = arith.addf %231, %232 : vector<2x512xf32>
    %234 = vector.extract_strided_slice %233 {offsets = [0, 0], sizes = [2, 128], strides = [1, 1]} : vector<2x512xf32> to vector<2x128xf32>
    %235 = arith.negf %234 : vector<2x128xf32>
    %236 = math.exp %235 : vector<2x128xf32>
    %cst_72 = arith.constant 1.000000e+00 : f32
    %237 = vector.broadcast %cst_72 : f32 to vector<2x128xf32>
    %238 = arith.addf %237, %236 : vector<2x128xf32>
    %239 = arith.divf %237, %238 : vector<2x128xf32>
    %240 = vector.extract_strided_slice %233 {offsets = [0, 128], sizes = [2, 128], strides = [1, 1]} : vector<2x512xf32> to vector<2x128xf32>
    %241 = arith.negf %240 : vector<2x128xf32>
    %242 = math.exp %241 : vector<2x128xf32>
    %cst_73 = arith.constant 1.000000e+00 : f32
    %243 = vector.broadcast %cst_73 : f32 to vector<2x128xf32>
    %244 = arith.addf %243, %242 : vector<2x128xf32>
    %245 = arith.divf %243, %244 : vector<2x128xf32>
    %246 = vector.extract_strided_slice %233 {offsets = [0, 256], sizes = [2, 128], strides = [1, 1]} : vector<2x512xf32> to vector<2x128xf32>
    %247 = math.tanh %246 : vector<2x128xf32>
    %248 = vector.extract_strided_slice %233 {offsets = [0, 384], sizes = [2, 128], strides = [1, 1]} : vector<2x512xf32> to vector<2x128xf32>
    %249 = arith.negf %248 : vector<2x128xf32>
    %250 = math.exp %249 : vector<2x128xf32>
    %cst_74 = arith.constant 1.000000e+00 : f32
    %251 = vector.broadcast %cst_74 : f32 to vector<2x128xf32>
    %252 = arith.addf %251, %250 : vector<2x128xf32>
    %253 = arith.divf %251, %252 : vector<2x128xf32>
    %254 = arith.mulf %245, %224 : vector<2x128xf32>
    %255 = arith.mulf %239, %247 : vector<2x128xf32>
    %256 = arith.addf %254, %255 : vector<2x128xf32>
    %257 = math.tanh %256 : vector<2x128xf32>
    %258 = arith.mulf %253, %257 : vector<2x128xf32>
    %c7_75 = arith.constant 7 : index
    %c0_76 = arith.constant 0 : index
    %c0_77 = arith.constant 0 : index
    %259 = vector.load %arg3[%c7_75, %c0_76, %c0_77] : memref<8x2x128xf32, #tpu.memory_space<vmem>>, vector<1x2x128xf32>
    %260 = vector.shape_cast %259 : vector<1x2x128xf32> to vector<2x128xf32>
    %261 = vector.shape_cast %258 : vector<2x128xf32> to vector<1x2x128xf32>
    tpu.vector_store %arg3[%c7_75, %c0_76, %c0_77], %261 {strides = array<i32>} : memref<8x2x128xf32, #tpu.memory_space<vmem>>, vector<1x2x128xf32>,
    %c0_78 = arith.constant 0 : index
    %c0_79 = arith.constant 0 : index
    %262 = vector.load %arg4[%c0_78, %c0_79] : memref<2x128xf32, #tpu.memory_space<vmem>>, vector<2x128xf32>
    tpu.vector_store %arg4[%c0_78, %c0_79], %258 {strides = array<i32>} : memref<2x128xf32, #tpu.memory_space<vmem>>, vector<2x128xf32>,
    %c0_80 = arith.constant 0 : index
    %c0_81 = arith.constant 0 : index
    %263 = vector.load %arg5[%c0_80, %c0_81] : memref<2x128xf32, #tpu.memory_space<vmem>>, vector<2x128xf32>
    tpu.vector_store %arg5[%c0_80, %c0_81], %256 {strides = array<i32>} : memref<2x128xf32, #tpu.memory_space<vmem>>, vector<2x128xf32>,
    return
  }
  func.func @transform_0(%arg0: i32) -> (i32, i32, i32) {
    %c0_i32 = arith.constant 0 : i32
    %c0_i32_0 = arith.constant 0 : i32
    %c0_i32_1 = arith.constant 0 : i32
    return %arg0, %c0_i32, %c0_i32_0 : i32, i32, i32
  }
  func.func @transform_1(%arg0: i32) -> (i32, i32) {
    %c0_i32 = arith.constant 0 : i32
    %c0_i32_0 = arith.constant 0 : i32
    %c0_i32_1 = arith.constant 0 : i32
    return %c0_i32, %c0_i32_0 : i32, i32
  }
  func.func @transform_2(%arg0: i32) -> (i32, i32, i32) {
    %c0_i32 = arith.constant 0 : i32
    %c0_i32_0 = arith.constant 0 : i32
    %c0_i32_1 = arith.constant 0 : i32
    return %arg0, %c0_i32, %c0_i32_0 : i32, i32, i32
  }
}

</mosaic_0001>

<bundles_post_ra>
// kernel: tpu_custom_call.1
= control target key start
LH: loop header
LB: loop body
LE: loop exit
PB: predicated region body
PF: predicated region fallthrough
CT: control target
= control target key end

     0   :  { %7 = vsyncpa [#allocation5], 0  ;;  %s2920_s0 = inlined_call_operand.hbm [shape: f32[8,2,512], index: 0, kind: input, shape index: {}]   ;;  %s2921_s1 = inlined_call_operand.hbm [shape: f32[128,512], index: 1, kind: input, shape index: {}]   ;;  %s2922_s2 = inlined_call_operand.hbm [shape: f32[8,2,128], index: 2, kind: output, shape index: {}]  }
   0x1   :  { %8 = vsyncpa [#allocation8], 0 }
   0x2   :  { %9 = vsyncpa [#allocation6], 0  ;;  %s2476_s9 = smov [#allocation4]   ;;  %s2404_s13 = scalar_lea.hbm %s2920_s0, 1024 }
   0x3   :  { %s15_s10 = sshll.u32 %s2476_s9, 4  ;;  %p2405_p0 = scmp.ne.s32.totalorder %s2920_s0, %s2404_s13  ;;  %s16_s10 = int_to_ptr.vmem [resolvable:$true] %s15_s10 }
   0x4   :  { %p2408_p1 = scmp.lt.u32.totalorder %s2404_s13, %s2920_s0 }
   0x6   :  { %p2410_p2 = pnand %p2408_p1, %p2405_p0 }
   0x8   :  { %2413 = shalt.err (!%p2410_p2)
}
   0x9   :  { %s2414_s18 = scalar_lea.vmem %s16_s10, 1024  ;;  %p2419_p4 = scmp.lt.s32.totalorder %s16_s10, %s16_s10 }
   0xa   :  { %p2415_p3 = scmp.ne.s32.totalorder %s16_s10, %s2414_s18  ;;  %p2420_p5 = scmp.lt.s32.totalorder %s2414_s18, %s2414_s18 }
   0xc   :  { %p2421_p6 = por %p2420_p5, %p2419_p4 }
   0xe   :  { %p2422_p7 = pnand %p2421_p6, %p2415_p3 }
  0x10   :  { %2425 = shalt.err (!%p2422_p7)
}
  0x11   :  { %s2477_s19 = smov 128   ;;  %s2478_s20 = smov 8  }
  0x12   :  { %21 = dma.hbm_to_vmem [thread:$0]  %s2920_s0, 1024, %s16_s10, [#allocation5], %s2477_s19, %s2477_s19, %s2478_s20  }
  0x13   :  { %s2479_s23 = smov [#allocation7]   ;;  %s2426_s27 = scalar_lea.hbm %s2921_s1, 8192 }
  0x14   :  { %s27_s24 = sshll.u32 %s2479_s23, 4  ;;  %p2427_p8 = scmp.ne.s32.totalorder %s2921_s1, %s2426_s27  ;;  %s28_s24 = int_to_ptr.vmem [resolvable:$true] %s27_s24 }
  0x15   :  { %p2430_p9 = scmp.lt.u32.totalorder %s2426_s27, %s2921_s1 }
  0x17   :  { %p2432_p10 = pnand %p2430_p9, %p2427_p8 }
  0x19   :  { %2435 = shalt.err (!%p2432_p10)
}
  0x1a   :  { %s2436_s4 = scalar_lea.vmem %s28_s24, 8192  ;;  %p2441_p12 = scmp.lt.s32.totalorder %s28_s24, %s28_s24 }
  0x1b   :  { %p2437_p11 = scmp.ne.s32.totalorder %s28_s24, %s2436_s4  ;;  %p2442_p13 = scmp.lt.s32.totalorder %s2436_s4, %s2436_s4 }
  0x1d   :  { %p2443_p0 = por %p2442_p13, %p2441_p12 }
  0x1f   :  { %p2444_p1 = pnand %p2443_p0, %p2437_p11 }
  0x21   :  { %2447 = shalt.err (!%p2444_p1)
}
  0x22   :  { %s2480_s0 = smov 512   ;;  %s2481_s5 = smov 32  }
  0x23   :  { %33 = dma.hbm_to_vmem [thread:$0]  %s2921_s1, 8192, %s28_s24, [#allocation8], %s2480_s0, %s2480_s0, %s2481_s5  }
  0x24   :  { %2470 = dma.done.wait [#allocation5], 1024  }
  0x25   :  { %2471 = vsyncadd [#allocation5], 4294966272 }
  0x26   :  { %2472 = dma.done.wait [#allocation8], 8192  }
  0x27   :  { %2473 = vsyncadd [#allocation8], 4294959104  ;;  %v2482_v0 = vmov 0.0   ;;  %v47_v1 = vld [vmem:[#allocation7 + $0x8] sm:$0xff]  ;;  %v49_v3 = vld [vmem:[#allocation7 + $0x18] sm:$0xff]  ;;  %s2484_s1 = smov [#allocation9]  }
  0x28   :  { %177 = vmatprep.mubr.f32.mxu0 %v2482_v0  ;;  %44 = vst [vmem:[#allocation2] sm:$0x3] %v2482_v0  ;;  %45 = vst [vmem:[#allocation3] sm:$0x3] %v2482_v0  ;;  %248 = vmatprep.mubr.f32.mxu1 %v2482_v0  ;;  %v51_v2 = vld [vmem:[#allocation7 + $0x28] sm:$0xff]  ;;  %v53_v5 = vld [vmem:[#allocation7 + $0x38] sm:$0xff] }
  0x29   :  { %v2530_v4 = vpack.c.bf16 %v51_v2, %v47_v1  ;;  %v46_v6 = vld [vmem:[#allocation7] sm:$0xff]  ;;  %v2532_v8 = vpack.c.bf16 %v53_v5, %v49_v3  ;;  %v48_v10 = vld [vmem:[#allocation7 + $0x10] sm:$0xff]  ;;  %v55_v12 = vld [vmem:[#allocation7 + $0x48] sm:$0xff]  ;;  %s1717_s8 = sshll.u32 %s2484_s1, 4  ;;  %s1718_s8 = int_to_ptr.vmem [resolvable:$true] %s1717_s8 }
  0x2a   :  { %v50_v7 = vld [vmem:[#allocation7 + $0x20] sm:$0xff]  ;;  %v52_v11 = vld [vmem:[#allocation7 + $0x30] sm:$0xff]  ;;  %v59_v14 = vld [vmem:[#allocation7 + $0x68] sm:$0xff]  ;;  %s2448_s9 = scalar_lea.vmem %s1718_s8, 256  ;;  %p2453_p3 = scmp.lt.s32.totalorder %s1718_s8, %s1718_s8 }
  0x2b   :  { %v2534_v9 = vpack.c.bf16 %v50_v7, %v46_v6  ;;  %1755 = vmatprep.subr.bf16.mxu0 %v2530_v4  ;;  %v2537_v13 = vpack.c.bf16 %v52_v11, %v48_v10  ;;  %v57_v15 = vld [vmem:[#allocation7 + $0x58] sm:$0xff]  ;;  %1787 = vmatprep.subr.bf16.mxu1 %v2532_v8  ;;  %v2541_v17 = vpack.c.bf16 %v59_v14, %v55_v12  ;;  %v54_v19 = vld [vmem:[#allocation7 + $0x40] sm:$0xff]  ;;  %v56_v21 = vld [vmem:[#allocation7 + $0x50] sm:$0xff]  ;;  %p2449_p2 = scmp.ne.s32.totalorder %s1718_s8, %s2448_s9  ;;  %p2454_p4 = scmp.lt.s32.totalorder %s2448_s9, %s2448_s9 }
  0x2c   :  { %v61_v16 = vld [vmem:[#allocation7 + $0x78] sm:$0xff]  ;;  %v58_v20 = vld [vmem:[#allocation7 + $0x60] sm:$0xff]  ;;  %v60_v23 = vld [vmem:[#allocation7 + $0x70] sm:$0xff] }
  0x2d   :  { %1757 = vmatpush1.bf16.msra.mxu0 %v2534_v9  ;;  %v2543_v18 = vpack.c.bf16 %v61_v16, %v57_v15  ;;  %1789 = vmatpush1.bf16.msra.mxu1 %v2537_v13  ;;  %v2546_v22 = vpack.c.bf16 %v58_v20, %v54_v19  ;;  %v63_v24 = vld [vmem:[#allocation7 + $0x88] sm:$0xff]  ;;  %v2550_v26 = vpack.c.bf16 %v60_v23, %v56_v21  ;;  %v65_v28 = vld [vmem:[#allocation7 + $0x98] sm:$0xff]  ;;  %v62_v30 = vld [vmem:[#allocation7 + $0x80] sm:$0xff]  ;;  %p2455_p5 = por %p2454_p4, %p2453_p3 }
  0x2e   :  { %v67_v25 = vld [vmem:[#allocation7 + $0xa8] sm:$0xff]  ;;  %1759 = vmatprep.subr.bf16.mxu0 %v2541_v17  ;;  %v69_v29 = vld [vmem:[#allocation7 + $0xb8] sm:$0xff]  ;;  %v66_v32 = vld [vmem:[#allocation7 + $0xa0] sm:$0xff] }
  0x2f   :  { %1791 = vmatprep.subr.bf16.mxu1 %v2543_v18  ;;  %v2552_v27 = vpack.c.bf16 %v67_v25, %v63_v24  ;;  %v2554_v31 = vpack.c.bf16 %v69_v29, %v65_v28  ;;  %v64_v33 = vld [vmem:[#allocation7 + $0x90] sm:$0xff]  ;;  %v2557_v35 = vpack.c.bf16 %v66_v32, %v62_v30  ;;  %v71_v36 = vld [vmem:[#allocation7 + $0xc8] sm:$0xff]  ;;  %v73_v38 = vld [vmem:[#allocation7 + $0xd8] sm:$0xff]  ;;  %p2456_p6 = pnand %p2455_p5, %p2449_p2 }
  0x30   :  { %v68_v34 = vld [vmem:[#allocation7 + $0xb0] sm:$0xff]  ;;  %v75_v37 = vld [vmem:[#allocation7 + $0xe8] sm:$0xff]  ;;  %v77_v41 = vld [vmem:[#allocation7 + $0xf8] sm:$0xff] }
  0x31   :  { %1761 = vmatpush1.bf16.msra.mxu0 %v2546_v22  ;;  %1793 = vmatpush1.bf16.msra.mxu1 %v2550_v26  ;;  %v2561_v39 = vpack.c.bf16 %v68_v34, %v64_v33  ;;  %v2563_v40 = vpack.c.bf16 %v75_v37, %v71_v36  ;;  %v70_v42 = vld [vmem:[#allocation7 + $0xc0] sm:$0xff]  ;;  %v2566_v44 = vpack.c.bf16 %v77_v41, %v73_v38  ;;  %v72_v45 = vld [vmem:[#allocation7 + $0xd0] sm:$0xff]  ;;  %v79_v47 = vld [vmem:[#allocation7 + $0x108] sm:$0xff] }
  0x32   :  { %1763 = vmatprep.subr.bf16.mxu0 %v2552_v27  ;;  %v74_v43 = vld [vmem:[#allocation7 + $0xe0] sm:$0xff]  ;;  %1795 = vmatprep.subr.bf16.mxu1 %v2554_v31  ;;  %v76_v46 = vld [vmem:[#allocation7 + $0xf0] sm:$0xff]  ;;  %v83_v48 = vld [vmem:[#allocation7 + $0x128] sm:$0xff] }
  0x33   :  { %v81_v49 = vld [vmem:[#allocation7 + $0x118] sm:$0xff]  ;;  %v2569_v51 = vpack.c.bf16 %v74_v43, %v70_v42  ;;  %v2573_v52 = vpack.c.bf16 %v76_v46, %v72_v45  ;;  %v2575_v53 = vpack.c.bf16 %v83_v48, %v79_v47  ;;  %v78_v54 = vld [vmem:[#allocation7 + $0x100] sm:$0xff]  ;;  %v80_v56 = vld [vmem:[#allocation7 + $0x110] sm:$0xff] }
  0x34   :  { %v85_v50 = vld [vmem:[#allocation7 + $0x138] sm:$0xff]  ;;  %v82_v55 = vld [vmem:[#allocation7 + $0x120] sm:$0xff]  ;;  %v84_v58 = vld [vmem:[#allocation7 + $0x130] sm:$0xff] }
  0x35   :  { %1765 = vmatpush1.bf16.msra.mxu0 %v2557_v35  ;;  %1797 = vmatpush1.bf16.msra.mxu1 %v2561_v39  ;;  %v2578_v57 = vpack.c.bf16 %v85_v50, %v81_v49  ;;  %v87_v59 = vld [vmem:[#allocation7 + $0x148] sm:$0xff]  ;;  %v89_v61 = vld [vmem:[#allocation7 + $0x158] sm:$0xff]  ;;  %v2581_v63 = vpack.c.bf16 %v82_v55, %v78_v54  ;;  %v2585_v1 = vpack.c.bf16 %v84_v58, %v80_v56  ;;  %v86_v3 = vld [vmem:[#allocation7 + $0x140] sm:$0xff]  ;;  %v2483_v49 = vmov 1983009808  }
  0x36   :  { %1767 = vmatprep.subr.bf16.mxu0 %v2563_v40  ;;  %1799 = vmatprep.subr.bf16.mxu1 %v2566_v44  ;;  %v91_v60 = vld [vmem:[#allocation7 + $0x168] sm:$0xff]  ;;  %v93_v62 = vld [vmem:[#allocation7 + $0x178] sm:$0xff]  ;;  %v90_v5 = vld [vmem:[#allocation7 + $0x160] sm:$0xff]  ;;  %v262_v50 = vunpack.c.l.s4 %v2483_v49  ;;  %v264_v54 = vlaneseq }
  0x37   :  { %v2587_v2 = vpack.c.bf16 %v91_v60, %v87_v59  ;;  %v88_v6 = vld [vmem:[#allocation7 + $0x150] sm:$0xff]  ;;  %v2590_v7 = vpack.c.bf16 %v93_v62, %v89_v61  ;;  %v95_v11 = vld [vmem:[#allocation7 + $0x188] sm:$0xff]  ;;  %v97_v14 = vld [vmem:[#allocation7 + $0x198] sm:$0xff]  ;;  %v2593_v16 = vpack.c.bf16 %v90_v5, %v86_v3 }
  0x38   :  { %v92_v10 = vld [vmem:[#allocation7 + $0x170] sm:$0xff]  ;;  %v99_v12 = vld [vmem:[#allocation7 + $0x1a8] sm:$0xff]  ;;  %v101_v15 = vld [vmem:[#allocation7 + $0x1b8] sm:$0xff]  ;;  %v263_v55 = vunpack.c.0.s8 %v262_v50  ;;  %v265_v56 = vshrl.u32 %v264_v54, 7 }
  0x39   :  { %1769 = vmatpush1.bf16.msra.mxu0 %v2569_v51  ;;  %1801 = vmatpush1.bf16.msra.mxu1 %v2573_v52  ;;  %v2597_v19 = vpack.c.bf16 %v92_v10, %v88_v6  ;;  %v2599_v20 = vpack.c.bf16 %v99_v12, %v95_v11  ;;  %v94_v21 = vld [vmem:[#allocation7 + $0x180] sm:$0xff]  ;;  %v96_v24 = vld [vmem:[#allocation7 + $0x190] sm:$0xff]  ;;  %v2602_v25 = vpack.c.bf16 %v101_v15, %v97_v14  ;;  %v103_v29 = vld [vmem:[#allocation7 + $0x1c8] sm:$0xff] }
  0x3a   :  { %1771 = vmatprep.subr.bf16.mxu0 %v2575_v53  ;;  %1803 = vmatprep.subr.bf16.mxu1 %v2578_v57  ;;  %v98_v23 = vld [vmem:[#allocation7 + $0x1a0] sm:$0xff]  ;;  %v100_v28 = vld [vmem:[#allocation7 + $0x1b0] sm:$0xff]  ;;  %v107_v30 = vld [vmem:[#allocation7 + $0x1e8] sm:$0xff]  ;;  %v2662_v59 = vsub.s32 %v263_v55, %v265_v56 }
  0x3b   :  { %v105_v32 = vld [vmem:[#allocation7 + $0x1d8] sm:$0xff]  ;;  %v2605_v34 = vpack.c.bf16 %v98_v23, %v94_v21  ;;  %v2609_v36 = vpack.c.bf16 %v100_v28, %v96_v24  ;;  %v2611_v37 = vpack.c.bf16 %v107_v30, %v103_v29  ;;  %v102_v38 = vld [vmem:[#allocation7 + $0x1c0] sm:$0xff]  ;;  %v104_v43 = vld [vmem:[#allocation7 + $0x1d0] sm:$0xff] }
  0x3c   :  { %v109_v33 = vld [vmem:[#allocation7 + $0x1f8] sm:$0xff]  ;;  %v106_v41 = vld [vmem:[#allocation7 + $0x1e0] sm:$0xff]  ;;  %v108_v45 = vld [vmem:[#allocation7 + $0x1f0] sm:$0xff] }
  0x3d   :  { %1773 = vmatpush1.bf16.msra.mxu0 %v2581_v63  ;;  %1805 = vmatpush1.bf16.msra.mxu1 %v2585_v1  ;;  %v2614_v42 = vpack.c.bf16 %v109_v33, %v105_v32  ;;  %v2617_v46 = vpack.c.bf16 %v106_v41, %v102_v38  ;;  %v2621_v47 = vpack.c.bf16 %v108_v45, %v104_v43  ;;  %v110_v48 = vld [vmem:[#allocation2] sm:$0x3]  ;;  %v112_v11 = vld [vmem:[#allocation4] sm:$0xff]  ;;  %v111_v45 = vld [vmem:[#allocation3] sm:$0x3] }
  0x3e   :  { %1775 = vmatprep.subr.bf16.mxu0 %v2587_v2  ;;  %1807 = vmatprep.subr.bf16.mxu1 %v2590_v7 }
  0x41   :  { %1777 = vmatpush1.bf16.msra.mxu0 %v2593_v16  ;;  %1809 = vmatpush1.bf16.msra.mxu1 %v2597_v19 }
  0x42   :  { %1779 = vmatprep.subr.bf16.mxu0 %v2599_v20  ;;  %1811 = vmatprep.subr.bf16.mxu1 %v2602_v25 }
  0x45   :  { %1781 = vmatpush1.bf16.msra.mxu0 %v2605_v34  ;;  %1813 = vmatpush1.bf16.msra.mxu1 %v2609_v36 }
  0x46   :  { %1783 = vmatprep.subr.bf16.mxu0 %v2611_v37  ;;  %1815 = vmatprep.subr.bf16.mxu1 %v2614_v42 }
  0x49   :  { %1785 = vmatpush1.bf16.msra.mxu0 %v2617_v46  ;;  %1817 = vmatpush1.bf16.msra.mxu1 %v2621_v47 }
  0x4a   :  { %1819 = vmatprep.subr.bf16.mxu0 %v2530_v4  ;;  %1851 = vmatprep.subr.bf16.mxu1 %v2532_v8 }
  0x4c   :  { %178 = vmatmul.mubr.f32.vlgmr.msra.gmra.mrb[0].mxu0 %v110_v48  ;;  %249 = vmatmul.mubr.f32.vlgmr.msra.gmra.mrb[0].mxu1 %v110_v48 }
  0x4d   :  { %1821 = vmatpush1.bf16.msra.mxu0 %v2534_v9  ;;  %1853 = vmatpush1.bf16.msra.mxu1 %v2537_v13 }
  0x4e   :  { %1823 = vmatprep.subr.bf16.mxu0 %v2541_v17  ;;  %1855 = vmatprep.subr.bf16.mxu1 %v2543_v18 }
  0x4f   :  { %376 = vmatprep.mubr.f32.mxu0 %v2482_v0  ;;  %447 = vmatprep.mubr.f32.mxu1 %v2482_v0 }
  0x51   :  { %1825 = vmatpush1.bf16.msra.mxu0 %v2546_v22  ;;  %1857 = vmatpush1.bf16.msra.mxu1 %v2550_v26 }
  0x52   :  { %1827 = vmatprep.subr.bf16.mxu0 %v2552_v27  ;;  %1859 = vmatprep.subr.bf16.mxu1 %v2554_v31 }
  0x55   :  { %1829 = vmatpush1.bf16.msra.mxu0 %v2557_v35  ;;  %1861 = vmatpush1.bf16.msra.mxu1 %v2561_v39 }
  0x56   :  { %1831 = vmatprep.subr.bf16.mxu0 %v2563_v40  ;;  %1863 = vmatprep.subr.bf16.mxu1 %v2566_v44 }
  0x59   :  { %1833 = vmatpush1.bf16.msra.mxu0 %v2569_v51  ;;  %1865 = vmatpush1.bf16.msra.mxu1 %v2573_v52 }
  0x5a   :  { %1835 = vmatprep.subr.bf16.mxu0 %v2575_v53  ;;  %1867 = vmatprep.subr.bf16.mxu1 %v2578_v57 }
  0x5d   :  { %1837 = vmatpush1.bf16.msra.mxu0 %v2581_v63  ;;  %1869 = vmatpush1.bf16.msra.mxu1 %v2585_v1 }
  0x5e   :  { %1839 = vmatprep.subr.bf16.mxu0 %v2587_v2  ;;  %1871 = vmatprep.subr.bf16.mxu1 %v2590_v7 }
  0x61   :  { %1841 = vmatpush1.bf16.msra.mxu0 %v2593_v16  ;;  %1873 = vmatpush1.bf16.msra.mxu1 %v2597_v19 }
  0x62   :  { %1843 = vmatprep.subr.bf16.mxu0 %v2599_v20  ;;  %1875 = vmatprep.subr.bf16.mxu1 %v2602_v25 }
  0x65   :  { %1845 = vmatpush1.bf16.msra.mxu0 %v2605_v34  ;;  %1877 = vmatpush1.bf16.msra.mxu1 %v2609_v36 }
  0x66   :  { %1847 = vmatprep.subr.bf16.mxu0 %v2611_v37  ;;  %1879 = vmatprep.subr.bf16.mxu1 %v2614_v42 }
  0x69   :  { %1849 = vmatpush1.bf16.msra.mxu0 %v2617_v46  ;;  %1881 = vmatpush1.bf16.msra.mxu1 %v2621_v47 }
  0x6a   :  { %1883 = vmatprep.subr.bf16.mxu0 %v2530_v4  ;;  %1915 = vmatprep.subr.bf16.mxu1 %v2532_v8 }
 0x11f   :  { %v179_v58 = vpop.f32.mrb[0].mxu0  ;;  %v250_v60 = vpop.f32.mrb[0].mxu1 }
 0x120   :  { %v181_v61 = vpop.f32.mrb[1].mxu0  ;;  %v252_v3 = vpop.f32.mrb[1].mxu1 }
 0x121   :  { %v259_v62 = vcombine.low %v179_v58, %v181_v61  ;;  %v260_v5 = vcombine.low %v250_v60, %v252_v3 }
 0x123   :  { %v267_v6 = vrot.slane %v259_v62, %v2662_v59  ;;  %v274_v10 = vrot.slane %v260_v5, %v2662_v59 }
 0x125   :  { %v275_v12 = vcombine.low %v267_v6, %v274_v10 }
 0x127   :  { %v277_v14 = vadd.f32 %v275_v12, %v112_v11 }
 0x129   :  { %v1730_v15 = vmul.f32 -1.442695, %v277_v14  ;;  %v285_v21 = vrot.slane %v277_v14, 2  ;;  %v296_v24 = vrot.slane %v277_v14, 6  ;;  %v293_v30 = vrot.slane %v277_v14, 4 }
 0x12b   :  { %2276 = vpow2.f32 %v1730_v15  ;;  %v1731_v23 = vmul.f32 -1.442695, %v285_v21  ;;  %v1732_v28 = vmul.f32 -1.442695, %v296_v24  ;;  %v311_v15 = vld [vmem:[#allocation4 + $0x8] sm:$0xff] }
 0x12d   :  { %2278 = vpow2.f32 %v1731_v23 }
 0x12e   :  { %2280 = vpow2.f32 %v1732_v28 }
 0x135   :  { %v2277_v29 = vpop.eup %2276 }
 0x136   :  { %v281_v32 = vadd.f32 1.0, %v2277_v29 }
 0x137   :  { %v2279_v33 = vpop.eup %2278 }
 0x138   :  { %2282 = vrcp.f32 %v281_v32  ;;  %v290_v38 = vadd.f32 1.0, %v2279_v33  ;;  %v2281_v41 = vpop.eup %2280 }
 0x139   :  { %2284 = vtanh.f32 %v293_v30  ;;  %v301_v50 = vadd.f32 1.0, %v2281_v41 }
 0x13a   :  { %2286 = vrcp.f32 %v290_v38 }
 0x13b   :  { %2288 = vrcp.f32 %v301_v50 }
 0x142   :  { %v2283_v43 = vpop.eup %2282 }
 0x143   :  { %v2285_v48 = vpop.eup %2284 }
 0x144   :  { %v2287_v49 = vpop.eup %2286  ;;  %v305_v55 = vmul.f32 %v2285_v48, %v2283_v43 }
 0x145   :  { %v304_v54 = vmul.f32 %v2287_v49, %v111_v45  ;;  %v2289_v58 = vpop.eup %2288 }
 0x147   :  { %v2666_v56 = vadd.f32 %v305_v55, %v304_v54 }
 0x149   :  { %2290 = vtanh.f32 %v2666_v56 }
 0x153   :  { %v2291_v60 = vpop.eup %2290 }
 0x154   :  { %v308_v61 = vmul.f32 %v2291_v60, %v2289_v58 }
 0x156   :  { %309 = vst [vmem:[#allocation9] sm:$0x3] %v308_v61  ;;  %377 = vmatmul.mubr.f32.vlgmr.msra.gmra.mrb[2].mxu0 %v308_v61  ;;  %448 = vmatmul.mubr.f32.vlgmr.msra.gmra.mrb[2].mxu1 %v308_v61 }
 0x157   :  { %1885 = vmatpush1.bf16.msra.mxu0 %v2534_v9  ;;  %1917 = vmatpush1.bf16.msra.mxu1 %v2537_v13 }
 0x158   :  { %1887 = vmatprep.subr.bf16.mxu0 %v2541_v17  ;;  %1919 = vmatprep.subr.bf16.mxu1 %v2543_v18 }
 0x159   :  { %576 = vmatprep.mubr.f32.mxu0 %v2482_v0  ;;  %647 = vmatprep.mubr.f32.mxu1 %v2482_v0 }
 0x15b   :  { %1889 = vmatpush1.bf16.msra.mxu0 %v2546_v22  ;;  %1921 = vmatpush1.bf16.msra.mxu1 %v2550_v26 }
 0x15c   :  { %1891 = vmatprep.subr.bf16.mxu0 %v2552_v27  ;;  %1923 = vmatprep.subr.bf16.mxu1 %v2554_v31 }
 0x15f   :  { %1893 = vmatpush1.bf16.msra.mxu0 %v2557_v35  ;;  %1925 = vmatpush1.bf16.msra.mxu1 %v2561_v39 }
 0x160   :  { %1895 = vmatprep.subr.bf16.mxu0 %v2563_v40  ;;  %1927 = vmatprep.subr.bf16.mxu1 %v2566_v44 }
 0x163   :  { %1897 = vmatpush1.bf16.msra.mxu0 %v2569_v51  ;;  %1929 = vmatpush1.bf16.msra.mxu1 %v2573_v52 }
 0x164   :  { %1899 = vmatprep.subr.bf16.mxu0 %v2575_v53  ;;  %1931 = vmatprep.subr.bf16.mxu1 %v2578_v57 }
 0x167   :  { %1901 = vmatpush1.bf16.msra.mxu0 %v2581_v63  ;;  %1933 = vmatpush1.bf16.msra.mxu1 %v2585_v1 }
 0x168   :  { %1903 = vmatprep.subr.bf16.mxu0 %v2587_v2  ;;  %1935 = vmatprep.subr.bf16.mxu1 %v2590_v7 }
 0x16b   :  { %1905 = vmatpush1.bf16.msra.mxu0 %v2593_v16  ;;  %1937 = vmatpush1.bf16.msra.mxu1 %v2597_v19 }
 0x16c   :  { %1907 = vmatprep.subr.bf16.mxu0 %v2599_v20  ;;  %1939 = vmatprep.subr.bf16.mxu1 %v2602_v25 }
 0x16f   :  { %1909 = vmatpush1.bf16.msra.mxu0 %v2605_v34  ;;  %1941 = vmatpush1.bf16.msra.mxu1 %v2609_v36 }
 0x170   :  { %1911 = vmatprep.subr.bf16.mxu0 %v2611_v37  ;;  %1943 = vmatprep.subr.bf16.mxu1 %v2614_v42 }
 0x173   :  { %1913 = vmatpush1.bf16.msra.mxu0 %v2617_v46  ;;  %1945 = vmatpush1.bf16.msra.mxu1 %v2621_v47 }
 0x174   :  { %1947 = vmatprep.subr.bf16.mxu0 %v2530_v4  ;;  %1979 = vmatprep.subr.bf16.mxu1 %v2532_v8 }
 0x229   :  { %v378_v62 = vpop.f32.mrb[2].mxu0  ;;  %v449_v3 = vpop.f32.mrb[2].mxu1 }
 0x22a   :  { %v380_v5 = vpop.f32.mrb[3].mxu0  ;;  %v451_v6 = vpop.f32.mrb[3].mxu1 }
 0x22b   :  { %v458_v10 = vcombine.low %v378_v62, %v380_v5  ;;  %v459_v11 = vcombine.low %v449_v3, %v451_v6 }
 0x22d   :  { %v466_v12 = vrot.slane %v458_v10, %v2662_v59  ;;  %v473_v14 = vrot.slane %v459_v11, %v2662_v59 }
 0x22f   :  { %v474_v21 = vcombine.low %v466_v12, %v473_v14 }
 0x231   :  { %v476_v23 = vadd.f32 %v474_v21, %v311_v15 }
 0x233   :  { %v1733_v24 = vmul.f32 -1.442695, %v476_v23  ;;  %v484_v28 = vrot.slane %v476_v23, 2  ;;  %v495_v30 = vrot.slane %v476_v23, 6  ;;  %v492_v38 = vrot.slane %v476_v23, 4  ;;  %v511_v23 = vld [vmem:[#allocation4 + $0x10] sm:$0xff] }
 0x235   :  { %2292 = vpow2.f32 %v1733_v24  ;;  %v1734_v29 = vmul.f32 -1.442695, %v484_v28  ;;  %v1735_v32 = vmul.f32 -1.442695, %v495_v30 }
 0x237   :  { %2294 = vpow2.f32 %v1734_v29 }
 0x238   :  { %2296 = vpow2.f32 %v1735_v32 }
 0x23f   :  { %v2293_v33 = vpop.eup %2292 }
 0x240   :  { %v480_v41 = vadd.f32 1.0, %v2293_v33 }
 0x241   :  { %v2295_v43 = vpop.eup %2294 }
 0x242   :  { %2298 = vrcp.f32 %v480_v41  ;;  %v489_v45 = vadd.f32 1.0, %v2295_v43  ;;  %v2297_v48 = vpop.eup %2296 }
 0x243   :  { %2300 = vtanh.f32 %v492_v38  ;;  %v500_v55 = vadd.f32 1.0, %v2297_v48 }
 0x244   :  { %2302 = vrcp.f32 %v489_v45 }
 0x245   :  { %2304 = vrcp.f32 %v500_v55 }
 0x24c   :  { %v2299_v49 = vpop.eup %2298 }
 0x24d   :  { %v2301_v50 = vpop.eup %2300 }
 0x24e   :  { %v2303_v54 = vpop.eup %2302  ;;  %v504_v60 = vmul.f32 %v2301_v50, %v2299_v49 }
 0x24f   :  { %v503_v58 = vmul.f32 %v2303_v54, %v2666_v56  ;;  %v2305_v62 = vpop.eup %2304 }
 0x251   :  { %v2706_v61 = vadd.f32 %v504_v60, %v503_v58 }
 0x253   :  { %2306 = vtanh.f32 %v2706_v61 }
 0x25d   :  { %v2307_v3 = vpop.eup %2306 }
 0x25e   :  { %v507_v5 = vmul.f32 %v2307_v3, %v2305_v62 }
 0x260   :  { %509 = vst [vmem:[#allocation9 + $0x2] sm:$0x3] %v507_v5  ;;  %577 = vmatmul.mubr.f32.vlgmr.msra.gmra.mrb[4].mxu0 %v507_v5  ;;  %648 = vmatmul.mubr.f32.vlgmr.msra.gmra.mrb[4].mxu1 %v507_v5 }
 0x261   :  { %1949 = vmatpush1.bf16.msra.mxu0 %v2534_v9  ;;  %1981 = vmatpush1.bf16.msra.mxu1 %v2537_v13 }
 0x262   :  { %1951 = vmatprep.subr.bf16.mxu0 %v2541_v17  ;;  %1983 = vmatprep.subr.bf16.mxu1 %v2543_v18 }
 0x263   :  { %776 = vmatprep.mubr.f32.mxu0 %v2482_v0  ;;  %847 = vmatprep.mubr.f32.mxu1 %v2482_v0 }
 0x265   :  { %1953 = vmatpush1.bf16.msra.mxu0 %v2546_v22  ;;  %1985 = vmatpush1.bf16.msra.mxu1 %v2550_v26 }
 0x266   :  { %1955 = vmatprep.subr.bf16.mxu0 %v2552_v27  ;;  %1987 = vmatprep.subr.bf16.mxu1 %v2554_v31 }
 0x269   :  { %1957 = vmatpush1.bf16.msra.mxu0 %v2557_v35  ;;  %1989 = vmatpush1.bf16.msra.mxu1 %v2561_v39 }
 0x26a   :  { %1959 = vmatprep.subr.bf16.mxu0 %v2563_v40  ;;  %1991 = vmatprep.subr.bf16.mxu1 %v2566_v44 }
 0x26d   :  { %1961 = vmatpush1.bf16.msra.mxu0 %v2569_v51  ;;  %1993 = vmatpush1.bf16.msra.mxu1 %v2573_v52 }
 0x26e   :  { %1963 = vmatprep.subr.bf16.mxu0 %v2575_v53  ;;  %1995 = vmatprep.subr.bf16.mxu1 %v2578_v57 }
 0x271   :  { %1965 = vmatpush1.bf16.msra.mxu0 %v2581_v63  ;;  %1997 = vmatpush1.bf16.msra.mxu1 %v2585_v1 }
 0x272   :  { %1967 = vmatprep.subr.bf16.mxu0 %v2587_v2  ;;  %1999 = vmatprep.subr.bf16.mxu1 %v2590_v7 }
 0x275   :  { %1969 = vmatpush1.bf16.msra.mxu0 %v2593_v16  ;;  %2001 = vmatpush1.bf16.msra.mxu1 %v2597_v19 }
 0x276   :  { %1971 = vmatprep.subr.bf16.mxu0 %v2599_v20  ;;  %2003 = vmatprep.subr.bf16.mxu1 %v2602_v25 }
 0x279   :  { %1973 = vmatpush1.bf16.msra.mxu0 %v2605_v34  ;;  %2005 = vmatpush1.bf16.msra.mxu1 %v2609_v36 }
 0x27a   :  { %1975 = vmatprep.subr.bf16.mxu0 %v2611_v37  ;;  %2007 = vmatprep.subr.bf16.mxu1 %v2614_v42 }
 0x27d   :  { %1977 = vmatpush1.bf16.msra.mxu0 %v2617_v46  ;;  %2009 = vmatpush1.bf16.msra.mxu1 %v2621_v47 }
 0x27e   :  { %2011 = vmatprep.subr.bf16.mxu0 %v2530_v4  ;;  %2043 = vmatprep.subr.bf16.mxu1 %v2532_v8 }
 0x333   :  { %v578_v56 = vpop.f32.mrb[4].mxu0  ;;  %v649_v6 = vpop.f32.mrb[4].mxu1 }
 0x334   :  { %v580_v10 = vpop.f32.mrb[5].mxu0  ;;  %v651_v11 = vpop.f32.mrb[5].mxu1 }
 0x335   :  { %v658_v12 = vcombine.low %v578_v56, %v580_v10  ;;  %v659_v14 = vcombine.low %v649_v6, %v651_v11 }
 0x337   :  { %v666_v15 = vrot.slane %v658_v12, %v2662_v59  ;;  %v673_v21 = vrot.slane %v659_v14, %v2662_v59 }
 0x339   :  { %v674_v24 = vcombine.low %v666_v15, %v673_v21 }
 0x33b   :  { %v676_v28 = vadd.f32 %v674_v24, %v511_v23 }
 0x33d   :  { %v1736_v29 = vmul.f32 -1.442695, %v676_v28  ;;  %v684_v30 = vrot.slane %v676_v28, 2  ;;  %v695_v33 = vrot.slane %v676_v28, 6  ;;  %v692_v43 = vrot.slane %v676_v28, 4  ;;  %v711_v28 = vld [vmem:[#allocation4 + $0x18] sm:$0xff] }
 0x33f   :  { %2308 = vpow2.f32 %v1736_v29  ;;  %v1737_v32 = vmul.f32 -1.442695, %v684_v30  ;;  %v1738_v38 = vmul.f32 -1.442695, %v695_v33 }
 0x341   :  { %2310 = vpow2.f32 %v1737_v32 }
 0x342   :  { %2312 = vpow2.f32 %v1738_v38 }
 0x349   :  { %v2309_v41 = vpop.eup %2308 }
 0x34a   :  { %v680_v45 = vadd.f32 1.0, %v2309_v41 }
 0x34b   :  { %v2311_v48 = vpop.eup %2310 }
 0x34c   :  { %2314 = vrcp.f32 %v680_v45  ;;  %v689_v49 = vadd.f32 1.0, %v2311_v48  ;;  %v2313_v50 = vpop.eup %2312 }
 0x34d   :  { %2316 = vtanh.f32 %v692_v43  ;;  %v700_v60 = vadd.f32 1.0, %v2313_v50 }
 0x34e   :  { %2318 = vrcp.f32 %v689_v49 }
 0x34f   :  { %2320 = vrcp.f32 %v700_v60 }
 0x356   :  { %v2315_v54 = vpop.eup %2314 }
 0x357   :  { %v2317_v55 = vpop.eup %2316 }
 0x358   :  { %v2319_v58 = vpop.eup %2318  ;;  %v704_v3 = vmul.f32 %v2317_v55, %v2315_v54 }
 0x359   :  { %v703_v62 = vmul.f32 %v2319_v58, %v2706_v61  ;;  %v2321_v56 = vpop.eup %2320 }
 0x35b   :  { %v2746_v5 = vadd.f32 %v704_v3, %v703_v62 }
 0x35d   :  { %2322 = vtanh.f32 %v2746_v5 }
 0x367   :  { %v2323_v6 = vpop.eup %2322 }
 0x368   :  { %v707_v10 = vmul.f32 %v2323_v6, %v2321_v56 }
 0x36a   :  { %709 = vst [vmem:[#allocation9 + $0x4] sm:$0x3] %v707_v10  ;;  %777 = vmatmul.mubr.f32.vlgmr.msra.gmra.mrb[6].mxu0 %v707_v10  ;;  %848 = vmatmul.mubr.f32.vlgmr.msra.gmra.mrb[6].mxu1 %v707_v10 }
 0x36b   :  { %2013 = vmatpush1.bf16.msra.mxu0 %v2534_v9  ;;  %2045 = vmatpush1.bf16.msra.mxu1 %v2537_v13 }
 0x36c   :  { %2015 = vmatprep.subr.bf16.mxu0 %v2541_v17  ;;  %2047 = vmatprep.subr.bf16.mxu1 %v2543_v18 }
 0x36d   :  { %976 = vmatprep.mubr.f32.mxu0 %v2482_v0  ;;  %1047 = vmatprep.mubr.f32.mxu1 %v2482_v0 }
 0x36f   :  { %2017 = vmatpush1.bf16.msra.mxu0 %v2546_v22  ;;  %2049 = vmatpush1.bf16.msra.mxu1 %v2550_v26 }
 0x370   :  { %2019 = vmatprep.subr.bf16.mxu0 %v2552_v27  ;;  %2051 = vmatprep.subr.bf16.mxu1 %v2554_v31 }
 0x373   :  { %2021 = vmatpush1.bf16.msra.mxu0 %v2557_v35  ;;  %2053 = vmatpush1.bf16.msra.mxu1 %v2561_v39 }
 0x374   :  { %2023 = vmatprep.subr.bf16.mxu0 %v2563_v40  ;;  %2055 = vmatprep.subr.bf16.mxu1 %v2566_v44 }
 0x377   :  { %2025 = vmatpush1.bf16.msra.mxu0 %v2569_v51  ;;  %2057 = vmatpush1.bf16.msra.mxu1 %v2573_v52 }
 0x378   :  { %2027 = vmatprep.subr.bf16.mxu0 %v2575_v53  ;;  %2059 = vmatprep.subr.bf16.mxu1 %v2578_v57 }
 0x37b   :  { %2029 = vmatpush1.bf16.msra.mxu0 %v2581_v63  ;;  %2061 = vmatpush1.bf16.msra.mxu1 %v2585_v1 }
 0x37c   :  { %2031 = vmatprep.subr.bf16.mxu0 %v2587_v2  ;;  %2063 = vmatprep.subr.bf16.mxu1 %v2590_v7 }
 0x37f   :  { %2033 = vmatpush1.bf16.msra.mxu0 %v2593_v16  ;;  %2065 = vmatpush1.bf16.msra.mxu1 %v2597_v19 }
 0x380   :  { %2035 = vmatprep.subr.bf16.mxu0 %v2599_v20  ;;  %2067 = vmatprep.subr.bf16.mxu1 %v2602_v25 }
 0x383   :  { %2037 = vmatpush1.bf16.msra.mxu0 %v2605_v34  ;;  %2069 = vmatpush1.bf16.msra.mxu1 %v2609_v36 }
 0x384   :  { %2039 = vmatprep.subr.bf16.mxu0 %v2611_v37  ;;  %2071 = vmatprep.subr.bf16.mxu1 %v2614_v42 }
 0x387   :  { %2041 = vmatpush1.bf16.msra.mxu0 %v2617_v46  ;;  %2073 = vmatpush1.bf16.msra.mxu1 %v2621_v47 }
 0x388   :  { %2075 = vmatprep.subr.bf16.mxu0 %v2530_v4  ;;  %2107 = vmatprep.subr.bf16.mxu1 %v2532_v8 }
 0x43d   :  { %v778_v61 = vpop.f32.mrb[6].mxu0  ;;  %v849_v11 = vpop.f32.mrb[6].mxu1 }
 0x43e   :  { %v780_v12 = vpop.f32.mrb[7].mxu0  ;;  %v851_v14 = vpop.f32.mrb[7].mxu1 }
 0x43f   :  { %v858_v15 = vcombine.low %v778_v61, %v780_v12  ;;  %v859_v21 = vcombine.low %v849_v11, %v851_v14 }
 0x441   :  { %v866_v23 = vrot.slane %v858_v15, %v2662_v59  ;;  %v873_v24 = vrot.slane %v859_v21, %v2662_v59 }
 0x443   :  { %v874_v29 = vcombine.low %v866_v23, %v873_v24 }
 0x445   :  { %v876_v30 = vadd.f32 %v874_v29, %v711_v28 }
 0x447   :  { %v1739_v32 = vmul.f32 -1.442695, %v876_v30  ;;  %v884_v33 = vrot.slane %v876_v30, 2  ;;  %v895_v41 = vrot.slane %v876_v30, 6  ;;  %v892_v48 = vrot.slane %v876_v30, 4  ;;  %v911_v30 = vld [vmem:[#allocation4 + $0x20] sm:$0xff] }
 0x449   :  { %2324 = vpow2.f32 %v1739_v32  ;;  %v1740_v38 = vmul.f32 -1.442695, %v884_v33  ;;  %v1741_v43 = vmul.f32 -1.442695, %v895_v41 }
 0x44b   :  { %2326 = vpow2.f32 %v1740_v38 }
 0x44c   :  { %2328 = vpow2.f32 %v1741_v43 }
 0x453   :  { %v2325_v45 = vpop.eup %2324 }
 0x454   :  { %v880_v49 = vadd.f32 1.0, %v2325_v45 }
 0x455   :  { %v2327_v50 = vpop.eup %2326 }
 0x456   :  { %2330 = vrcp.f32 %v880_v49  ;;  %v889_v54 = vadd.f32 1.0, %v2327_v50  ;;  %v2329_v55 = vpop.eup %2328 }
 0x457   :  { %2332 = vtanh.f32 %v892_v48  ;;  %v900_v3 = vadd.f32 1.0, %v2329_v55 }
 0x458   :  { %2334 = vrcp.f32 %v889_v54 }
 0x459   :  { %2336 = vrcp.f32 %v900_v3 }
 0x460   :  { %v2331_v58 = vpop.eup %2330 }
 0x461   :  { %v2333_v60 = vpop.eup %2332 }
 0x462   :  { %v2335_v62 = vpop.eup %2334  ;;  %v904_v6 = vmul.f32 %v2333_v60, %v2331_v58 }
 0x463   :  { %v903_v56 = vmul.f32 %v2335_v62, %v2746_v5  ;;  %v2337_v61 = vpop.eup %2336 }
 0x465   :  { %v2786_v10 = vadd.f32 %v904_v6, %v903_v56 }
 0x467   :  { %2338 = vtanh.f32 %v2786_v10 }
 0x471   :  { %v2339_v11 = vpop.eup %2338 }
 0x472   :  { %v907_v12 = vmul.f32 %v2339_v11, %v2337_v61 }
 0x474   :  { %909 = vst [vmem:[#allocation9 + $0x6] sm:$0x3] %v907_v12  ;;  %977 = vmatmul.mubr.f32.vlgmr.msra.gmra.mrb[8].mxu0 %v907_v12  ;;  %1048 = vmatmul.mubr.f32.vlgmr.msra.gmra.mrb[8].mxu1 %v907_v12 }
 0x475   :  { %2077 = vmatpush1.bf16.msra.mxu0 %v2534_v9  ;;  %2109 = vmatpush1.bf16.msra.mxu1 %v2537_v13 }
 0x476   :  { %2079 = vmatprep.subr.bf16.mxu0 %v2541_v17  ;;  %2111 = vmatprep.subr.bf16.mxu1 %v2543_v18 }
 0x477   :  { %1176 = vmatprep.mubr.f32.mxu0 %v2482_v0  ;;  %1247 = vmatprep.mubr.f32.mxu1 %v2482_v0 }
 0x479   :  { %2081 = vmatpush1.bf16.msra.mxu0 %v2546_v22  ;;  %2113 = vmatpush1.bf16.msra.mxu1 %v2550_v26 }
 0x47a   :  { %2083 = vmatprep.subr.bf16.mxu0 %v2552_v27  ;;  %2115 = vmatprep.subr.bf16.mxu1 %v2554_v31 }
 0x47d   :  { %2085 = vmatpush1.bf16.msra.mxu0 %v2557_v35  ;;  %2117 = vmatpush1.bf16.msra.mxu1 %v2561_v39 }
 0x47e   :  { %2087 = vmatprep.subr.bf16.mxu0 %v2563_v40  ;;  %2119 = vmatprep.subr.bf16.mxu1 %v2566_v44 }
 0x481   :  { %2089 = vmatpush1.bf16.msra.mxu0 %v2569_v51  ;;  %2121 = vmatpush1.bf16.msra.mxu1 %v2573_v52 }
 0x482   :  { %2091 = vmatprep.subr.bf16.mxu0 %v2575_v53  ;;  %2123 = vmatprep.subr.bf16.mxu1 %v2578_v57 }
 0x485   :  { %2093 = vmatpush1.bf16.msra.mxu0 %v2581_v63  ;;  %2125 = vmatpush1.bf16.msra.mxu1 %v2585_v1 }
 0x486   :  { %2095 = vmatprep.subr.bf16.mxu0 %v2587_v2  ;;  %2127 = vmatprep.subr.bf16.mxu1 %v2590_v7 }
 0x489   :  { %2097 = vmatpush1.bf16.msra.mxu0 %v2593_v16  ;;  %2129 = vmatpush1.bf16.msra.mxu1 %v2597_v19 }
 0x48a   :  { %2099 = vmatprep.subr.bf16.mxu0 %v2599_v20  ;;  %2131 = vmatprep.subr.bf16.mxu1 %v2602_v25 }
 0x48d   :  { %2101 = vmatpush1.bf16.msra.mxu0 %v2605_v34  ;;  %2133 = vmatpush1.bf16.msra.mxu1 %v2609_v36 }
 0x48e   :  { %2103 = vmatprep.subr.bf16.mxu0 %v2611_v37  ;;  %2135 = vmatprep.subr.bf16.mxu1 %v2614_v42 }
 0x491   :  { %2105 = vmatpush1.bf16.msra.mxu0 %v2617_v46  ;;  %2137 = vmatpush1.bf16.msra.mxu1 %v2621_v47 }
 0x492   :  { %2139 = vmatprep.subr.bf16.mxu0 %v2530_v4  ;;  %2171 = vmatprep.subr.bf16.mxu1 %v2532_v8 }
 0x547   :  { %v978_v5 = vpop.f32.mrb[8].mxu0  ;;  %v1049_v14 = vpop.f32.mrb[8].mxu1 }
 0x548   :  { %v980_v15 = vpop.f32.mrb[9].mxu0  ;;  %v1051_v21 = vpop.f32.mrb[9].mxu1 }
 0x549   :  { %v1058_v23 = vcombine.low %v978_v5, %v980_v15  ;;  %v1059_v24 = vcombine.low %v1049_v14, %v1051_v21 }
 0x54b   :  { %v1066_v28 = vrot.slane %v1058_v23, %v2662_v59  ;;  %v1073_v29 = vrot.slane %v1059_v24, %v2662_v59 }
 0x54d   :  { %v1074_v32 = vcombine.low %v1066_v28, %v1073_v29 }
 0x54f   :  { %v1076_v33 = vadd.f32 %v1074_v32, %v911_v30 }
 0x551   :  { %v1742_v38 = vmul.f32 -1.442695, %v1076_v33  ;;  %v1084_v41 = vrot.slane %v1076_v33, 2  ;;  %v1095_v45 = vrot.slane %v1076_v33, 6  ;;  %v1092_v50 = vrot.slane %v1076_v33, 4  ;;  %v1111_v33 = vld [vmem:[#allocation4 + $0x28] sm:$0xff] }
 0x553   :  { %2340 = vpow2.f32 %v1742_v38  ;;  %v1743_v43 = vmul.f32 -1.442695, %v1084_v41  ;;  %v1744_v48 = vmul.f32 -1.442695, %v1095_v45 }
 0x555   :  { %2342 = vpow2.f32 %v1743_v43 }
 0x556   :  { %2344 = vpow2.f32 %v1744_v48 }
 0x55d   :  { %v2341_v49 = vpop.eup %2340 }
 0x55e   :  { %v1080_v54 = vadd.f32 1.0, %v2341_v49 }
 0x55f   :  { %v2343_v55 = vpop.eup %2342 }
 0x560   :  { %2346 = vrcp.f32 %v1080_v54  ;;  %v1089_v58 = vadd.f32 1.0, %v2343_v55  ;;  %v2345_v60 = vpop.eup %2344 }
 0x561   :  { %2348 = vtanh.f32 %v1092_v50  ;;  %v1100_v6 = vadd.f32 1.0, %v2345_v60 }
 0x562   :  { %2350 = vrcp.f32 %v1089_v58 }
 0x563   :  { %2352 = vrcp.f32 %v1100_v6 }
 0x56a   :  { %v2347_v62 = vpop.eup %2346 }
 0x56b   :  { %v2349_v3 = vpop.eup %2348 }
 0x56c   :  { %v2351_v56 = vpop.eup %2350  ;;  %v1104_v11 = vmul.f32 %v2349_v3, %v2347_v62 }
 0x56d   :  { %v1103_v61 = vmul.f32 %v2351_v56, %v2786_v10  ;;  %v2353_v5 = vpop.eup %2352 }
 0x56f   :  { %v2826_v12 = vadd.f32 %v1104_v11, %v1103_v61 }
 0x571   :  { %2354 = vtanh.f32 %v2826_v12 }
 0x57b   :  { %v2355_v14 = vpop.eup %2354 }
 0x57c   :  { %v1107_v15 = vmul.f32 %v2355_v14, %v2353_v5 }
 0x57e   :  { %1109 = vst [vmem:[#allocation9 + $0x8] sm:$0x3] %v1107_v15  ;;  %1177 = vmatmul.mubr.f32.vlgmr.msra.gmra.mrb[10].mxu0 %v1107_v15  ;;  %1248 = vmatmul.mubr.f32.vlgmr.msra.gmra.mrb[10].mxu1 %v1107_v15 }
 0x57f   :  { %2141 = vmatpush1.bf16.msra.mxu0 %v2534_v9  ;;  %2173 = vmatpush1.bf16.msra.mxu1 %v2537_v13 }
 0x580   :  { %2143 = vmatprep.subr.bf16.mxu0 %v2541_v17  ;;  %2175 = vmatprep.subr.bf16.mxu1 %v2543_v18 }
 0x581   :  { %1376 = vmatprep.mubr.f32.mxu0 %v2482_v0  ;;  %1447 = vmatprep.mubr.f32.mxu1 %v2482_v0 }
 0x583   :  { %2145 = vmatpush1.bf16.msra.mxu0 %v2546_v22  ;;  %2177 = vmatpush1.bf16.msra.mxu1 %v2550_v26 }
 0x584   :  { %2147 = vmatprep.subr.bf16.mxu0 %v2552_v27  ;;  %2179 = vmatprep.subr.bf16.mxu1 %v2554_v31 }
 0x587   :  { %2149 = vmatpush1.bf16.msra.mxu0 %v2557_v35  ;;  %2181 = vmatpush1.bf16.msra.mxu1 %v2561_v39 }
 0x588   :  { %2151 = vmatprep.subr.bf16.mxu0 %v2563_v40  ;;  %2183 = vmatprep.subr.bf16.mxu1 %v2566_v44 }
 0x58b   :  { %2153 = vmatpush1.bf16.msra.mxu0 %v2569_v51  ;;  %2185 = vmatpush1.bf16.msra.mxu1 %v2573_v52 }
 0x58c   :  { %2155 = vmatprep.subr.bf16.mxu0 %v2575_v53  ;;  %2187 = vmatprep.subr.bf16.mxu1 %v2578_v57 }
 0x58f   :  { %2157 = vmatpush1.bf16.msra.mxu0 %v2581_v63  ;;  %2189 = vmatpush1.bf16.msra.mxu1 %v2585_v1 }
 0x590   :  { %2159 = vmatprep.subr.bf16.mxu0 %v2587_v2  ;;  %2191 = vmatprep.subr.bf16.mxu1 %v2590_v7 }
 0x593   :  { %2161 = vmatpush1.bf16.msra.mxu0 %v2593_v16  ;;  %2193 = vmatpush1.bf16.msra.mxu1 %v2597_v19 }
 0x594   :  { %2163 = vmatprep.subr.bf16.mxu0 %v2599_v20  ;;  %2195 = vmatprep.subr.bf16.mxu1 %v2602_v25 }
 0x597   :  { %2165 = vmatpush1.bf16.msra.mxu0 %v2605_v34  ;;  %2197 = vmatpush1.bf16.msra.mxu1 %v2609_v36 }
 0x598   :  { %2167 = vmatprep.subr.bf16.mxu0 %v2611_v37  ;;  %2199 = vmatprep.subr.bf16.mxu1 %v2614_v42 }
 0x59b   :  { %2169 = vmatpush1.bf16.msra.mxu0 %v2617_v46  ;;  %2201 = vmatpush1.bf16.msra.mxu1 %v2621_v47 }
 0x59c   :  { %2203 = vmatprep.subr.bf16.mxu0 %v2530_v4  ;;  %2235 = vmatprep.subr.bf16.mxu1 %v2532_v8 }
 0x651   :  { %v1178_v10 = vpop.f32.mrb[10].mxu0  ;;  %v1249_v21 = vpop.f32.mrb[10].mxu1 }
 0x652   :  { %v1180_v23 = vpop.f32.mrb[11].mxu0  ;;  %v1251_v24 = vpop.f32.mrb[11].mxu1 }
 0x653   :  { %v1258_v28 = vcombine.low %v1178_v10, %v1180_v23  ;;  %v1259_v29 = vcombine.low %v1249_v21, %v1251_v24 }
 0x655   :  { %v1266_v30 = vrot.slane %v1258_v28, %v2662_v59  ;;  %v1273_v32 = vrot.slane %v1259_v29, %v2662_v59 }
 0x657   :  { %v1274_v38 = vcombine.low %v1266_v30, %v1273_v32 }
 0x659   :  { %v1276_v41 = vadd.f32 %v1274_v38, %v1111_v33  ;;  %v1511_v38 = vld [vmem:[#allocation4 + $0x38] sm:$0xff] }
 0x65b   :  { %v1745_v43 = vmul.f32 -1.442695, %v1276_v41  ;;  %v1284_v45 = vrot.slane %v1276_v41, 2  ;;  %v1295_v4 = vrot.slane %v1276_v41, 6  ;;  %v1292_v50 = vrot.slane %v1276_v41, 4 }
 0x65d   :  { %2356 = vpow2.f32 %v1745_v43  ;;  %v1746_v48 = vmul.f32 -1.442695, %v1284_v45  ;;  %v1747_v8 = vmul.f32 -1.442695, %v1295_v4 }
 0x65f   :  { %2358 = vpow2.f32 %v1746_v48 }
 0x660   :  { %2360 = vpow2.f32 %v1747_v8 }
 0x667   :  { %v2357_v49 = vpop.eup %2356 }
 0x668   :  { %v1280_v54 = vadd.f32 1.0, %v2357_v49 }
 0x669   :  { %v2359_v55 = vpop.eup %2358 }
 0x66a   :  { %2362 = vrcp.f32 %v1280_v54  ;;  %v1289_v58 = vadd.f32 1.0, %v2359_v55  ;;  %v2361_v60 = vpop.eup %2360 }
 0x66b   :  { %2364 = vtanh.f32 %v1292_v50  ;;  %v1300_v6 = vadd.f32 1.0, %v2361_v60 }
 0x66c   :  { %2366 = vrcp.f32 %v1289_v58 }
 0x66d   :  { %2368 = vrcp.f32 %v1300_v6 }
 0x674   :  { %v2363_v62 = vpop.eup %2362 }
 0x675   :  { %v2365_v3 = vpop.eup %2364 }
 0x676   :  { %v2367_v56 = vpop.eup %2366  ;;  %v1304_v11 = vmul.f32 %v2365_v3, %v2363_v62 }
 0x677   :  { %v1303_v61 = vmul.f32 %v2367_v56, %v2826_v12  ;;  %v2369_v14 = vpop.eup %2368 }
 0x679   :  { %v2866_v5 = vadd.f32 %v1304_v11, %v1303_v61 }
 0x67b   :  { %2370 = vtanh.f32 %v2866_v5 }
 0x685   :  { %v2371_v15 = vpop.eup %2370 }
 0x686   :  { %v1307_v10 = vmul.f32 %v2371_v15, %v2369_v14 }
 0x688   :  { %1309 = vst [vmem:[#allocation9 + $0xa] sm:$0x3] %v1307_v10  ;;  %1377 = vmatmul.mubr.f32.vlgmr.msra.gmra.mrb[12].mxu0 %v1307_v10  ;;  %1448 = vmatmul.mubr.f32.vlgmr.msra.gmra.mrb[12].mxu1 %v1307_v10 }
 0x689   :  { %2205 = vmatpush1.bf16.msra.mxu0 %v2534_v9  ;;  %2237 = vmatpush1.bf16.msra.mxu1 %v2537_v13 }
 0x68a   :  { %2207 = vmatprep.subr.bf16.mxu0 %v2541_v17  ;;  %2239 = vmatprep.subr.bf16.mxu1 %v2543_v18 }
 0x68b   :  { %1576 = vmatprep.mubr.f32.mxu0 %v2482_v0  ;;  %1647 = vmatprep.mubr.f32.mxu1 %v2482_v0 }
 0x68d   :  { %2209 = vmatpush1.bf16.msra.mxu0 %v2546_v22  ;;  %2241 = vmatpush1.bf16.msra.mxu1 %v2550_v26 }
 0x68e   :  { %2211 = vmatprep.subr.bf16.mxu0 %v2552_v27  ;;  %2243 = vmatprep.subr.bf16.mxu1 %v2554_v31  ;;  %v1311_v31 = vld [vmem:[#allocation4 + $0x30] sm:$0xff] }
 0x691   :  { %2213 = vmatpush1.bf16.msra.mxu0 %v2557_v35  ;;  %2245 = vmatpush1.bf16.msra.mxu1 %v2561_v39 }
 0x692   :  { %2215 = vmatprep.subr.bf16.mxu0 %v2563_v40  ;;  %2247 = vmatprep.subr.bf16.mxu1 %v2566_v44 }
 0x695   :  { %2217 = vmatpush1.bf16.msra.mxu0 %v2569_v51  ;;  %2249 = vmatpush1.bf16.msra.mxu1 %v2573_v52 }
 0x696   :  { %2219 = vmatprep.subr.bf16.mxu0 %v2575_v53  ;;  %2251 = vmatprep.subr.bf16.mxu1 %v2578_v57 }
 0x699   :  { %2221 = vmatpush1.bf16.msra.mxu0 %v2581_v63  ;;  %2253 = vmatpush1.bf16.msra.mxu1 %v2585_v1 }
 0x69a   :  { %2223 = vmatprep.subr.bf16.mxu0 %v2587_v2  ;;  %2255 = vmatprep.subr.bf16.mxu1 %v2590_v7 }
 0x69d   :  { %2225 = vmatpush1.bf16.msra.mxu0 %v2593_v16  ;;  %2257 = vmatpush1.bf16.msra.mxu1 %v2597_v19 }
 0x69e   :  { %2227 = vmatprep.subr.bf16.mxu0 %v2599_v20  ;;  %2259 = vmatprep.subr.bf16.mxu1 %v2602_v25 }
 0x6a1   :  { %2229 = vmatpush1.bf16.msra.mxu0 %v2605_v34  ;;  %2261 = vmatpush1.bf16.msra.mxu1 %v2609_v36 }
 0x6a2   :  { %2231 = vmatprep.subr.bf16.mxu0 %v2611_v37  ;;  %2263 = vmatprep.subr.bf16.mxu1 %v2614_v42 }
 0x6a5   :  { %2233 = vmatpush1.bf16.msra.mxu0 %v2617_v46  ;;  %2265 = vmatpush1.bf16.msra.mxu1 %v2621_v47 }
 0x75b   :  { %v1378_v0 = vpop.f32.mrb[12].mxu0  ;;  %v1449_v9 = vpop.f32.mrb[12].mxu1 }
 0x75c   :  { %v1380_v13 = vpop.f32.mrb[13].mxu0  ;;  %v1451_v17 = vpop.f32.mrb[13].mxu1 }
 0x75d   :  { %v1458_v18 = vcombine.low %v1378_v0, %v1380_v13  ;;  %v1459_v22 = vcombine.low %v1449_v9, %v1451_v17 }
 0x75f   :  { %v1466_v26 = vrot.slane %v1458_v18, %v2662_v59  ;;  %v1473_v27 = vrot.slane %v1459_v22, %v2662_v59 }
 0x761   :  { %v1474_v35 = vcombine.low %v1466_v26, %v1473_v27 }
 0x763   :  { %v1476_v39 = vadd.f32 %v1474_v35, %v1311_v31 }
 0x765   :  { %v1748_v40 = vmul.f32 -1.442695, %v1476_v39  ;;  %v1484_v44 = vrot.slane %v1476_v39, 2  ;;  %v1495_v52 = vrot.slane %v1476_v39, 6  ;;  %v1492_v63 = vrot.slane %v1476_v39, 4 }
 0x767   :  { %2372 = vpow2.f32 %v1748_v40  ;;  %v1749_v51 = vmul.f32 -1.442695, %v1484_v44  ;;  %v1750_v53 = vmul.f32 -1.442695, %v1495_v52 }
 0x769   :  { %2374 = vpow2.f32 %v1749_v51 }
 0x76a   :  { %2376 = vpow2.f32 %v1750_v53 }
 0x771   :  { %v2373_v57 = vpop.eup %2372 }
 0x772   :  { %v1480_v1 = vadd.f32 1.0, %v2373_v57 }
 0x773   :  { %v2375_v2 = vpop.eup %2374 }
 0x774   :  { %2378 = vrcp.f32 %v1480_v1  ;;  %v1489_v7 = vadd.f32 1.0, %v2375_v2  ;;  %v2377_v16 = vpop.eup %2376 }
 0x775   :  { %2380 = vtanh.f32 %v1492_v63  ;;  %v1500_v34 = vadd.f32 1.0, %v2377_v16 }
 0x776   :  { %2382 = vrcp.f32 %v1489_v7 }
 0x777   :  { %2384 = vrcp.f32 %v1500_v34 }
 0x77e   :  { %v2379_v19 = vpop.eup %2378 }
 0x77f   :  { %v2381_v20 = vpop.eup %2380 }
 0x780   :  { %v2383_v25 = vpop.eup %2382  ;;  %v1504_v37 = vmul.f32 %v2381_v20, %v2379_v19 }
 0x781   :  { %v1503_v36 = vmul.f32 %v2383_v25, %v2866_v5  ;;  %v2385_v46 = vpop.eup %2384 }
 0x783   :  { %v1505_v42 = vadd.f32 %v1504_v37, %v1503_v36 }
 0x785   :  { %2386 = vtanh.f32 %v1505_v42 }
 0x78f   :  { %v2387_v47 = vpop.eup %2386 }
 0x790   :  { %v1507_v12 = vmul.f32 %v2387_v47, %v2385_v46 }
 0x792   :  { %1509 = vst [vmem:[#allocation9 + $0xc] sm:$0x3] %v1507_v12  ;;  %1577 = vmatmul.mubr.f32.vlgmr.msra.gmra.mrb[14].mxu0 %v1507_v12  ;;  %1648 = vmatmul.mubr.f32.vlgmr.msra.gmra.mrb[14].mxu1 %v1507_v12 }
 0x865   :  { %v1578_v21 = vpop.f32.mrb[14].mxu0  ;;  %v1649_v23 = vpop.f32.mrb[14].mxu1 }
 0x866   :  { %v1580_v24 = vpop.f32.mrb[15].mxu0  ;;  %v1651_v28 = vpop.f32.mrb[15].mxu1 }
 0x867   :  { %v1658_v29 = vcombine.low %v1578_v21, %v1580_v24  ;;  %v1659_v30 = vcombine.low %v1649_v23, %v1651_v28 }
 0x869   :  { %v1666_v32 = vrot.slane %v1658_v29, %v2662_v59  ;;  %v1673_v33 = vrot.slane %v1659_v30, %v2662_v59 }
 0x86b   :  { %v1674_v41 = vcombine.low %v1666_v32, %v1673_v33 }
 0x86d   :  { %v1676_v43 = vadd.f32 %v1674_v41, %v1511_v38 }
 0x86f   :  { %v1751_v45 = vmul.f32 -1.442695, %v1676_v43  ;;  %v1684_v48 = vrot.slane %v1676_v43, 2  ;;  %v1695_v8 = vrot.slane %v1676_v43, 6  ;;  %v1692_v54 = vrot.slane %v1676_v43, 4 }
 0x871   :  { %2388 = vpow2.f32 %v1751_v45  ;;  %v1752_v4 = vmul.f32 -1.442695, %v1684_v48  ;;  %v1753_v49 = vmul.f32 -1.442695, %v1695_v8 }
 0x873   :  { %2390 = vpow2.f32 %v1752_v4 }
 0x874   :  { %2392 = vpow2.f32 %v1753_v49 }
 0x87b   :  { %v2389_v50 = vpop.eup %2388 }
 0x87c   :  { %v1680_v55 = vadd.f32 1.0, %v2389_v50 }
 0x87d   :  { %v2391_v58 = vpop.eup %2390 }
 0x87e   :  { %2394 = vrcp.f32 %v1680_v55  ;;  %v1689_v60 = vadd.f32 1.0, %v2391_v58  ;;  %v2393_v59 = vpop.eup %2392 }
 0x87f   :  { %2396 = vtanh.f32 %v1692_v54  ;;  %v1700_v6 = vadd.f32 1.0, %v2393_v59 }
 0x880   :  { %2398 = vrcp.f32 %v1689_v60 }
 0x881   :  { %2400 = vrcp.f32 %v1700_v6 }
 0x888   :  { %v2395_v62 = vpop.eup %2394 }
 0x889   :  { %v2397_v3 = vpop.eup %2396 }
 0x88a   :  { %v2399_v56 = vpop.eup %2398  ;;  %v1704_v11 = vmul.f32 %v2397_v3, %v2395_v62 }
 0x88b   :  { %v1703_v61 = vmul.f32 %v2399_v56, %v1505_v42  ;;  %v2401_v14 = vpop.eup %2400 }
 0x88d   :  { %v1705_v5 = vadd.f32 %v1704_v11, %v1703_v61 }
 0x88f   :  { %2402 = vtanh.f32 %v1705_v5  ;;  %1711 = vst [vmem:[#allocation3] sm:$0x3] %v1705_v5 }
 0x899   :  { %v2403_v15 = vpop.eup %2402 }
 0x89a   :  { %v1707_v10 = vmul.f32 %v2403_v15, %v2401_v14 }
 0x89c   :  { %1710 = vst [vmem:[#allocation2] sm:$0x3] %v1707_v10  ;;  %1709 = vst [vmem:[#allocation9 + $0xe] sm:$0x3] %v1707_v10 }
 0x89d   :  { %2459 = shalt.err (!%p2456_p6)
}
 0x89e   :  { %s2460_s12 = scalar_lea.hbm %s2922_s2, 256 }
 0x89f   :  { %p2461_p7 = scmp.ne.s32.totalorder %s2922_s2, %s2460_s12  ;;  %p2464_p8 = scmp.lt.u32.totalorder %s2460_s12, %s2922_s2 }
 0x8a1   :  { %p2466_p9 = pnand %p2464_p8, %p2461_p7 }
 0x8a3   :  { %2469 = shalt.err (!%p2466_p9)
}
 0x8a4   :  { %s2485_s17 = smov 2  }
 0x8a5   :  { %1723 = dma.vmem_to_hbm [thread:$0]  %s1718_s8, 256, %s2922_s2, [#allocation6], %s2481_s5, %s2481_s5, %s2485_s17  }
 0x8a6   :  { %2474 = dma.done.wait [#allocation6], 256  }
 0x8a7   :  { %2475 = vsyncadd [#allocation6], 4294967040 }
 0x8a8   :  { %1727 = vsyncpa [#allocation5], 1 }
 0x8a9   :  { %1728 = vsyncpa [#allocation8], 1 }
 0x8aa   :  { %1729 = vsyncpa [#allocation6], 1 }

</bundles_post_ra>
